<compile_context>
chip_gen: v7x
topology: tpu7x:2x2x1
jax: 0.10.0
libtpu: 0.0.40
codegen_flags: <defaults>
</compile_context>

<pallas_src>
import functools

import jax
import jax.numpy as jnp
from jax.experimental import pallas as pl
from jax.experimental.pallas import tpu as pltpu

H1 = 400          # net_in hidden width (PyTorch)
H2 = 300          # net_out hidden width (PyTorch)
H1_P = 512        # 400 padded to a multiple of 128
H2_P = 384        # 300 padded to a multiple of 128
OUT_P = 128       # 1 padded to a full lane width (lane-dense stores)


def _round_up(x, m):
    return ((x + m - 1) // m) * m


def _critic_kernel(s_ref, a_ref, w1_ref, b1_ref, w2s_ref, w2a_ref, b2_ref,
                   w3_ref, b3_ref, o_ref):
    """Fused DDPG critic: relu(s@W1+b1) -> +action column -> relu(.@W2+b2) -> .@W3+b3."""
    cdt = w1_ref.dtype  # matmul operand dtype (bf16 or f32)

    # Layer 1: s @ W1 + b1, ReLU (accumulate in f32, bias/ReLU on the f32 VPU path).
    h1 = jnp.dot(s_ref[...], w1_ref[...], preferred_element_type=jnp.float32)
    h1 = jnp.maximum(h1 + b1_ref[...], 0.0)

    # Layer 2: concat([h1, a]) @ W2 + b2  ==  h1 @ W2s + a * w2a_row + b2, ReLU.
    h2 = jnp.dot(h1.astype(cdt), w2s_ref[...], preferred_element_type=jnp.float32)
    h2 = h2 + a_ref[...] * w2a_ref[...] + b2_ref[...]   # (bb,1)*(1,H2_P) broadcast
    h2 = jnp.maximum(h2, 0.0)

    # Layer 3 (lane-dense padded output): h2 @ W3 + b3.
    out = jnp.dot(h2.astype(cdt), w3_ref[...], preferred_element_type=jnp.float32)
    o_ref[...] = (out + b3_ref[...]).astype(o_ref.dtype)


def prepare_params(params, compute_dtype=jnp.bfloat16):
    """Transpose PyTorch-layout weights to (in, out), zero-pad to lane-aligned shapes.

    params (PyTorch layout): w1 (400, obs), b1 (400,), w2 (300, 401), b2 (300,),
                             w3 (1, 300),  b3 (1,).
    """
    obs_size = params["w1"].shape[1]
    obs_p = _round_up(obs_size, 128)

    w1 = jnp.zeros((obs_p, H1_P), jnp.float32).at[:obs_size, :H1].set(params["w1"].T)
    b1 = jnp.zeros((1, H1_P), jnp.float32).at[0, :H1].set(params["b1"])

    w2 = params["w2"]                                   # (300, 401)
    w2s = jnp.zeros((H1_P, H2_P), jnp.float32).at[:H1, :H2].set(w2[:, :H1].T)
    w2a = jnp.zeros((1, H2_P), jnp.float32).at[0, :H2].set(w2[:, H1])   # action column
    b2 = jnp.zeros((1, H2_P), jnp.float32).at[0, :H2].set(params["b2"])

    w3 = jnp.zeros((H2_P, OUT_P), jnp.float32).at[:H2, :1].set(params["w3"].T)
    b3 = jnp.zeros((1, OUT_P), jnp.float32).at[0, :1].set(params["b3"])

    return {
        "w1": w1.astype(compute_dtype),
        "b1": b1,                          # f32 (VPU path)
        "w2s": w2s.astype(compute_dtype),
        "w2a": w2a,                        # f32 (VPU path, broadcast with the action)
        "b2": b2,                          # f32
        "w3": w3.astype(compute_dtype),
        "b3": b3,                          # f32
    }


@functools.partial(jax.jit, static_argnames=("block_b",))
def ddpg_critic_forward(s, a, prepped, block_b=512):
    """DDPGCritic forward.  s: [B, obs_size] f32, a: [B, 1] f32 -> [B, 1] f32."""
    B, obs_size = s.shape
    assert a.shape == (B, 1), "DDPGCritic hard-codes a single action column (400 + 1)"

    obs_p, h1_p = prepped["w1"].shape
    h2_p, out_p = prepped["w3"].shape
    cdt = prepped["w1"].dtype

    # Lane-aligned, compute-dtype observation tile; action column stays f32.
    s_p = jnp.zeros((B, obs_p), cdt).at[:, :obs_size].set(s.astype(cdt))
    a = a.astype(jnp.float32)

    # Batch tile: as large as possible (cap 1024 keeps VMEM usage ~5 MiB, safe on
    # v5e/v6e/v7x default scoped-VMEM limits), sublane-aligned for bf16 packing.
    bb = min(block_b, 1024, B)
    if bb != B:
        bb = min(max(16, (bb // 16) * 16), B)
    grid = (pl.cdiv(B, bb),)

    full = lambda shape: pl.BlockSpec(shape, lambda i: (0, 0))  # constant block -> DMA'd once

    flops = 2 * B * (obs_p * h1_p + h1_p * h2_p + h2_p * out_p)
    param_bytes = sum(int(prepped[k].size) * prepped[k].dtype.itemsize
                      for k in ("w1", "b1", "w2s", "w2a", "b2", "w3", "b3"))
    bytes_accessed = (int(s_p.size) * s_p.dtype.itemsize + int(a.size) * 4
                      + param_bytes + B * out_p * 4)
    cost = pl.CostEstimate(flops=flops, transcendentals=0, bytes_accessed=bytes_accessed)

    out_padded = pl.pallas_call(
        _critic_kernel,
        out_shape=jax.ShapeDtypeStruct((B, out_p), jnp.float32),
        grid_spec=pltpu.PrefetchScalarGridSpec(
            num_scalar_prefetch=0,
            grid=grid,
            in_specs=[
                pl.BlockSpec((bb, obs_p), lambda i: (i, 0)),   # s tile
                pl.BlockSpec((bb, 1), lambda i: (i, 0)),       # action column
                full((obs_p, h1_p)),                           # W1
                full((1, h1_p)),                               # b1
                full((h1_p, h2_p)),                            # W2 (state part)
                full((1, h2_p)),                               # W2 (action row)
                full((1, h2_p)),                               # b2
                full((h2_p, out_p)),                           # W3 (padded to 128 cols)
                full((1, out_p)),                              # b3
            ],
            out_specs=pl.BlockSpec((bb, out_p), lambda i: (i, 0)),
        ),
        compiler_params=pltpu.CompilerParams(
            dimension_semantics=("parallel",),   # shards the batch grid across TCs on v7x
        ),
        cost_estimate=cost,
    )(s_p, a, prepped["w1"], prepped["b1"], prepped["w2s"], prepped["w2a"],
      prepped["b2"], prepped["w3"], prepped["b3"])

    return out_padded[:, :1]


def init_ddpg_critic_params(key, obs_size):
    """PyTorch-style nn.Linear init: U(-1/sqrt(fan_in), 1/sqrt(fan_in)); PyTorch layout."""
    def linear(k, fan_in, fan_out):
        kw, kb = jax.random.split(k)
        bound = 1.0 / (fan_in ** 0.5)
        w = jax.random.uniform(kw, (fan_out, fan_in), jnp.float32, -bound, bound)
        b = jax.random.uniform(kb, (fan_out,), jnp.float32, -bound, bound)
        return w, b

    k1, k2, k3 = jax.random.split(key, 3)
    w1, b1 = linear(k1, obs_size, H1)
    w2, b2 = linear(k2, H1 + 1, H2)
    w3, b3 = linear(k3, H2, 1)
    return {"w1": w1, "b1": b1, "w2": w2, "b2": b2, "w3": w3, "b3": b3}


def ddpg_critic_reference(s, a, params):
    """Pure-JAX mirror of the PyTorch forward (f32)."""
    h = jnp.maximum(s @ params["w1"].T + params["b1"], 0.0)
    cat = jnp.concatenate([h, a], axis=1)
    h = jnp.maximum(cat @ params["w2"].T + params["b2"], 0.0)
    return h @ params["w3"].T + params["b3"]


if __name__ == "__main__":
    key = jax.random.PRNGKey(0)
    obs_size, batch = 24, 128

    ks, ka, kp = jax.random.split(key, 3)
    s = jax.random.normal(ks, (batch, obs_size), jnp.float32)
    a = jax.random.uniform(ka, (batch, 1), jnp.float32, -1.0, 1.0)
    params = init_ddpg_critic_params(kp, obs_size)

    ref = ddpg_critic_reference(s, a, params)

    # bf16 matmul operands (v6e/v7x fast path), block_b=64 -> grid of 2 tiles.
    prepped_bf16 = prepare_params(params, compute_dtype=jnp.bfloat16)
    out = jax.block_until_ready(ddpg_critic_forward(s, a, prepped_bf16, block_b=64))
    assert out.shape == (batch, 1), out.shape
    assert jnp.allclose(out, ref, atol=5e-2, rtol=5e-2), "bf16 kernel mismatch vs reference"

    # Full-precision path for a tight numerical check.
    prepped_f32 = prepare_params(params, compute_dtype=jnp.float32)
    out_f32 = jax.block_until_ready(ddpg_critic_forward(s, a, prepped_f32, block_b=64))
    assert jnp.allclose(out_f32, ref, atol=1e-4, rtol=1e-4), "f32 kernel mismatch vs reference"

    print("KERNEL_OK")
</pallas_src>

<mosaic_0001>
module attributes {stable_mosaic.version = 11 : i64} {
  func.func @_critic_kernel(%arg0: i32, %arg1: memref<64x128xbf16, #tpu.memory_space<vmem>>, %arg2: memref<64x1xf32, #tpu.memory_space<vmem>>, %arg3: memref<128x512xbf16, #tpu.memory_space<vmem>>, %arg4: memref<1x512xf32, #tpu.memory_space<vmem>>, %arg5: memref<512x384xbf16, #tpu.memory_space<vmem>>, %arg6: memref<1x384xf32, #tpu.memory_space<vmem>>, %arg7: memref<1x384xf32, #tpu.memory_space<vmem>>, %arg8: memref<384x128xbf16, #tpu.memory_space<vmem>>, %arg9: memref<1x128xf32, #tpu.memory_space<vmem>>, %arg10: memref<64x128xf32, #tpu.memory_space<vmem>>) attributes {dimension_semantics = [#tpu.dimension_semantics<parallel>], iteration_bounds = array<i64: 2>, scalar_prefetch = 0 : i64, scratch_operands = 0 : i64, tpu.core_type = #tpu.core_type<tc>, window_params = [{transform_indices = @transform_0, window_bounds = array<i64: 64, 128>}, {transform_indices = @transform_1, window_bounds = array<i64: 64, 1>}, {pipeline_mode = #tpu.pipeline_mode<synchronous>, transform_indices = @transform_2, window_bounds = array<i64: 128, 512>}, {pipeline_mode = #tpu.pipeline_mode<synchronous>, transform_indices = @transform_3, window_bounds = array<i64: 1, 512>}, {pipeline_mode = #tpu.pipeline_mode<synchronous>, transform_indices = @transform_4, window_bounds = array<i64: 512, 384>}, {pipeline_mode = #tpu.pipeline_mode<synchronous>, transform_indices = @transform_5, window_bounds = array<i64: 1, 384>}, {pipeline_mode = #tpu.pipeline_mode<synchronous>, transform_indices = @transform_6, window_bounds = array<i64: 1, 384>}, {pipeline_mode = #tpu.pipeline_mode<synchronous>, transform_indices = @transform_7, window_bounds = array<i64: 384, 128>}, {pipeline_mode = #tpu.pipeline_mode<synchronous>, transform_indices = @transform_8, window_bounds = array<i64: 1, 128>}, {transform_indices = @transform_9, window_bounds = array<i64: 64, 128>}]} {
    %c0 = arith.constant 0 : index
    %c0_0 = arith.constant 0 : index
    %0 = vector.load %arg1[%c0, %c0_0] : memref<64x128xbf16, #tpu.memory_space<vmem>>, vector<64x128xbf16>
    %c0_1 = arith.constant 0 : index
    %c0_2 = arith.constant 0 : index
    %1 = vector.load %arg3[%c0_1, %c0_2] : memref<128x512xbf16, #tpu.memory_space<vmem>>, vector<128x512xbf16>
    %cst = arith.constant dense<0.000000e+00> : vector<64x512xf32>
    %2 = tpu.matmul %0, %1, %cst {dimension_numbers = #tpu.dot_dimension_numbers<[1], [0], [0], [1], [0, 0, 1, 1], [], []>} : vector<64x128xbf16>, vector<128x512xbf16>, vector<64x512xf32> -> vector<64x512xf32>
    %c0_3 = arith.constant 0 : index
    %c0_4 = arith.constant 0 : index
    %3 = vector.load %arg4[%c0_3, %c0_4] : memref<1x512xf32, #tpu.memory_space<vmem>>, vector<1x512xf32>
    %4 = vector.broadcast %3 : vector<1x512xf32> to vector<64x512xf32>
    %5 = arith.addf %2, %4 : vector<64x512xf32>
    %cst_5 = arith.constant 0.000000e+00 : f32
    %6 = vector.broadcast %cst_5 : f32 to vector<64x512xf32>
    %7 = arith.maximumf %5, %6 : vector<64x512xf32>
    %8 = arith.truncf %7 : vector<64x512xf32> to vector<64x512xbf16>
    %c0_6 = arith.constant 0 : index
    %c0_7 = arith.constant 0 : index
    %9 = vector.load %arg5[%c0_6, %c0_7] : memref<512x384xbf16, #tpu.memory_space<vmem>>, vector<512x384xbf16>
    %cst_8 = arith.constant dense<0.000000e+00> : vector<64x384xf32>
    %10 = tpu.matmul %8, %9, %cst_8 {dimension_numbers = #tpu.dot_dimension_numbers<[1], [0], [0], [1], [0, 0, 1, 1], [], []>} : vector<64x512xbf16>, vector<512x384xbf16>, vector<64x384xf32> -> vector<64x384xf32>
    %c0_9 = arith.constant 0 : index
    %c0_10 = arith.constant 0 : index
    %11 = vector.load %arg2[%c0_9, %c0_10] : memref<64x1xf32, #tpu.memory_space<vmem>>, vector<64x1xf32>
    %c0_11 = arith.constant 0 : index
    %c0_12 = arith.constant 0 : index
    %12 = vector.load %arg6[%c0_11, %c0_12] : memref<1x384xf32, #tpu.memory_space<vmem>>, vector<1x384xf32>
    %13 = vector.broadcast %11 : vector<64x1xf32> to vector<64x384xf32>
    %14 = vector.broadcast %12 : vector<1x384xf32> to vector<64x384xf32>
    %15 = arith.mulf %13, %14 : vector<64x384xf32>
    %16 = arith.addf %10, %15 : vector<64x384xf32>
    %c0_13 = arith.constant 0 : index
    %c0_14 = arith.constant 0 : index
    %17 = vector.load %arg7[%c0_13, %c0_14] : memref<1x384xf32, #tpu.memory_space<vmem>>, vector<1x384xf32>
    %18 = vector.broadcast %17 : vector<1x384xf32> to vector<64x384xf32>
    %19 = arith.addf %16, %18 : vector<64x384xf32>
    %cst_15 = arith.constant 0.000000e+00 : f32
    %20 = vector.broadcast %cst_15 : f32 to vector<64x384xf32>
    %21 = arith.maximumf %19, %20 : vector<64x384xf32>
    %22 = arith.truncf %21 : vector<64x384xf32> to vector<64x384xbf16>
    %c0_16 = arith.constant 0 : index
    %c0_17 = arith.constant 0 : index
    %23 = vector.load %arg8[%c0_16, %c0_17] : memref<384x128xbf16, #tpu.memory_space<vmem>>, vector<384x128xbf16>
    %cst_18 = arith.constant dense<0.000000e+00> : vector<64x128xf32>
    %24 = tpu.matmul %22, %23, %cst_18 {dimension_numbers = #tpu.dot_dimension_numbers<[1], [0], [0], [1], [0, 0, 1, 1], [], []>} : vector<64x384xbf16>, vector<384x128xbf16>, vector<64x128xf32> -> vector<64x128xf32>
    %c0_19 = arith.constant 0 : index
    %c0_20 = arith.constant 0 : index
    %25 = vector.load %arg9[%c0_19, %c0_20] : memref<1x128xf32, #tpu.memory_space<vmem>>, vector<1x128xf32>
    %26 = vector.broadcast %25 : vector<1x128xf32> to vector<64x128xf32>
    %27 = arith.addf %24, %26 : vector<64x128xf32>
    %c0_21 = arith.constant 0 : index
    %c0_22 = arith.constant 0 : index
    %28 = vector.load %arg10[%c0_21, %c0_22] : memref<64x128xf32, #tpu.memory_space<vmem>>, vector<64x128xf32>
    tpu.vector_store %arg10[%c0_21, %c0_22], %27 {strides = array<i32>} : memref<64x128xf32, #tpu.memory_space<vmem>>, vector<64x128xf32>,
    return
  }
  func.func @transform_0(%arg0: i32) -> (i32, i32) {
    %c0_i32 = arith.constant 0 : i32
    %c0_i32_0 = arith.constant 0 : i32
    return %arg0, %c0_i32 : i32, i32
  }
  func.func @transform_1(%arg0: i32) -> (i32, i32) {
    %c0_i32 = arith.constant 0 : i32
    %c0_i32_0 = arith.constant 0 : i32
    return %arg0, %c0_i32 : i32, i32
  }
  func.func @transform_2(%arg0: i32) -> (i32, i32) {
    %c0_i32 = arith.constant 0 : i32
    %c0_i32_0 = arith.constant 0 : i32
    %c0_i32_1 = arith.constant 0 : i32
    return %c0_i32, %c0_i32_0 : i32, i32
  }
  func.func @transform_3(%arg0: i32) -> (i32, i32) {
    %c0_i32 = arith.constant 0 : i32
    %c0_i32_0 = arith.constant 0 : i32
    %c0_i32_1 = arith.constant 0 : i32
    return %c0_i32, %c0_i32_0 : i32, i32
  }
  func.func @transform_4(%arg0: i32) -> (i32, i32) {
    %c0_i32 = arith.constant 0 : i32
    %c0_i32_0 = arith.constant 0 : i32
    %c0_i32_1 = arith.constant 0 : i32
    return %c0_i32, %c0_i32_0 : i32, i32
  }
  func.func @transform_5(%arg0: i32) -> (i32, i32) {
    %c0_i32 = arith.constant 0 : i32
    %c0_i32_0 = arith.constant 0 : i32
    %c0_i32_1 = arith.constant 0 : i32
    return %c0_i32, %c0_i32_0 : i32, i32
  }
  func.func @transform_6(%arg0: i32) -> (i32, i32) {
    %c0_i32 = arith.constant 0 : i32
    %c0_i32_0 = arith.constant 0 : i32
    %c0_i32_1 = arith.constant 0 : i32
    return %c0_i32, %c0_i32_0 : i32, i32
  }
  func.func @transform_7(%arg0: i32) -> (i32, i32) {
    %c0_i32 = arith.constant 0 : i32
    %c0_i32_0 = arith.constant 0 : i32
    %c0_i32_1 = arith.constant 0 : i32
    return %c0_i32, %c0_i32_0 : i32, i32
  }
  func.func @transform_8(%arg0: i32) -> (i32, i32) {
    %c0_i32 = arith.constant 0 : i32
    %c0_i32_0 = arith.constant 0 : i32
    %c0_i32_1 = arith.constant 0 : i32
    return %c0_i32, %c0_i32_0 : i32, i32
  }
  func.func @transform_9(%arg0: i32) -> (i32, i32) {
    %c0_i32 = arith.constant 0 : i32
    %c0_i32_0 = arith.constant 0 : i32
    return %arg0, %c0_i32 : i32, i32
  }
}

</mosaic_0001>

<bundles_post_ra>
// kernel: ddpg_critic_forward.1
= control target key start
LH: loop header
LB: loop body
LE: loop exit
PB: predicated region body
PF: predicated region fallthrough
CT: control target
= control target key end

     0   :  { %14 = vsyncpa [#allocation3], 0  ;;  %s2995_s30 = smov 0   ;;  %s3468_s0 = inlined_call_operand.vmem [shape: bf16[128,128], index: 0, kind: input, shape index: {}]   ;;  %s3469_s1 = inlined_call_operand.vmem [shape: f32[128,1], index: 1, kind: input, shape index: {}]   ;;  %s3470_s2 = inlined_call_operand.vmem [shape: bf16[128,512], index: 2, kind: input, shape index: {}]   ;;  %s3471_s3 = inlined_call_operand.vmem [shape: f32[1,512], index: 3, kind: input, shape index: {}]   ;;  %s3472_s4 = inlined_call_operand.hbm [shape: bf16[512,384], index: 4, kind: input, shape index: {}]   ;;  %s3473_s5 = inlined_call_operand.vmem [shape: f32[1,384], index: 5, kind: input, shape index: {}]   ;;  %s3474_s6 = inlined_call_operand.vmem [shape: f32[1,384], index: 6, kind: input, shape index: {}]   ;;  %s3475_s7 = inlined_call_operand.vmem [shape: bf16[384,128], index: 7, kind: input, shape index: {}]   ;;  %s3476_s8 = inlined_call_operand.vmem [shape: f32[1,128], index: 8, kind: input, shape index: {}]   ;;  %s3477_s9 = inlined_call_operand.vmem [shape: f32[128,128], index: 9, kind: output, shape index: {}]  }
   0x1 LB: > { %s2313_s10 = sadd.s32 4294967295, %s2939_s30   ;;  %p2315_p0 = scmp.ge.s32.totalorder %s2939_s30, 1  ;;  %s2939_s30 = sphi %s2995_s30, %s20_s30  }
   0x2   : > { %p250_p1 = scmp.lt.s32.totalorder %s2939_s30, 3  ;;  %s2941_s11 = smov [#allocation2]  }
   0x3   : > { %s268_s12 = sshll.u32 %s2941_s11, 4  ;;  %p3009_p3 = scmp.eq.s32.totalorder %s2313_s10, 0  ;;  %s269_s12 = int_to_ptr.vmem [resolvable:$true] %s268_s12 }
   0x4   : > { %p3003_p2 = pnand %p2315_p0, %p250_p1  ;;  %s2901_s18 = scalar_lea.hbm %s3472_s4, 12288 }
   0x5   : > { %s3482_s14 = scalar_select %p3009_p3, 1, 0 }
   0x6   : > { %s3481_s13 = scalar_select %p3003_p2, 1, 0 }
   0x7   : > { %p2677_p4 = pneg %p3003_p2  ;;  %p2902_p6 = scmp.ne.s32.totalorder %s3472_s4, %s2901_s18 }
   0x8   : > { %p2908_p10 = scmp.lt.u32.totalorder %s2901_s18, %s3472_s4 }
   0x9   : > { %p3017_p5 = pnand %p3009_p3, %p2677_p4 }
   0xb   : > { %p2903_p7 = pneg %p3017_p5 }
   0xd   : > { %p2904_p8 = pnand %p2903_p7, %p2902_p6 }
   0xf   : > { %p2905_p9 = pneg %p2904_p8 }
  0x11   : > { %p2910_p11 = pnand %p2908_p10, %p2905_p9 }
  0x13   : > { %2913 = shalt.err (!%p2910_p11)
}
  0x14   : > { %s2914_s23 = scalar_lea.vmem %s269_s12, 12288  ;;  %p2922_p1 = scmp.lt.s32.totalorder %s269_s12, %s269_s12 }
  0x15   : > { %p2915_p12 = scmp.ne.s32.totalorder %s269_s12, %s2914_s23  ;;  %p2923_p4 = scmp.lt.s32.totalorder %s2914_s23, %s2914_s23 }
  0x17   : > { %p2917_p13 = pnand %p2915_p12, %p2903_p7  ;;  %p2924_p3 = por %p2923_p4, %p2922_p1 }
  0x19   : > { %p2918_p0 = pneg %p2917_p13 }
  0x1b   : > { %p2925_p2 = pnand %p2924_p3, %p2918_p0 }
  0x1d   : > { %2928 = shalt.err (!%p2925_p2)
}
  0x1e   : > { %s2942_s24 = smov 192   ;;  %s2943_s25 = smov 12  }
  0x1f   : > { %2680 = dma.hbm_to_vmem [thread:$0]  (!%p3017_p5), %s3472_s4, 12288, %s269_s12, [#allocation3], %s2942_s24, %s2942_s24, %s2943_s25  }
  0x20   : > { %p3484_p6 = scmp.ne.s32.totalorder %s3481_s13, 0 }
  0x21   : > { %p3485_p8 = scmp.ne.s32.totalorder (!%p3484_p6), %s3482_s14, 0 }
  0x22   : > { %314 = sbr.rel (%p3484_p6) target bundleno = 845 (0x34d), region = 56 }
  0x29   : > { %2934 = dma.done.wait (%p3485_p8), [#allocation3], 12288  }
  0x2a   : > { %2936 = vsyncadd (%p3485_p8), [#allocation3], 4294955008  ;;  %v2944_v0 = vmov 0   ;;  %s2320_s28 = sshll.u32 %s2313_s10, 3  ;;  %v2697_v1 = vld [vmem:[%s3470_s2 + $0x4] ss:$16 sps:$4 sm:$0xff]  }
  0x2b   : > { %652 = vmatprep.mubr.bf16.mxu0 %v2944_v0  ;;  %725 = vmatprep.mubr.bf16.mxu1 %v2944_v0  ;;  %p356_p2 = scmp.lt.s32.totalorder %s2320_s28, 15  ;;  %v2699_v2 = vld [vmem:[%s3470_s2] ss:$16 sps:$4 sm:$0xff]   ;;  %v2700_v3 = vld [vmem:[%s3470_s2 + $0x24] ss:$16 sps:$4 sm:$0xff]  }
  0x2c   : > { %2695 = vset.pattern.permute.xlu0 %v2944_v0  ;;  %2696 = vset.pattern.permute.xlu1 %v2944_v0  ;;  %v2702_v4 = vld [vmem:[%s3470_s2 + $0x20] ss:$16 sps:$4 sm:$0xff]   ;;  %v2703_v5 = vld [vmem:[%s3470_s2 + $0x44] ss:$16 sps:$4 sm:$0xff]   ;;  %v2722_v10 = vld [vmem:[%s3470_s2 + $0xc] ss:$16 sps:$4 sm:$0xff]  }
  0x2d   : > { %620 = vmatprep.subr.bf16.mxu0 %v2697_v1  ;;  %s3487_s28 = smov (!%p356_p2, %s2320_s28), 15  ;;  %v2705_v6 = vld [vmem:[%s3470_s2 + $0x40] ss:$16 sps:$4 sm:$0xff]   ;;  %v2706_v7 = vld [vmem:[%s3470_s2 + $0x64] ss:$16 sps:$4 sm:$0xff]   ;;  %693 = vmatprep.subr.bf16.mxu1 %v2722_v10 }
  0x2e   : > { %621 = vmatpush1.bf16.msra.mxu0 %v2699_v2  ;;  %s2321_s19 = sshll.u32 %s3487_s28, 2  ;;  %v2708_v8 = vld [vmem:[%s3470_s2 + $0x60] ss:$16 sps:$4 sm:$0xff]   ;;  %v2709_v9 = vld [vmem:[%s3470_s2 + $0x84] ss:$16 sps:$4 sm:$0xff]  }
  0x2f   : > { %622 = vmatprep.subr.bf16.mxu0 %v2700_v3  ;;  %s3076_s26 = scalar_lea.vmem %s3468_s0, %s2321_s19  ;;  %v2724_v11 = vld [vmem:[%s3470_s2 + $0x8] ss:$16 sps:$4 sm:$0xff]   ;;  %v2725_v12 = vld [vmem:[%s3470_s2 + $0x2c] ss:$16 sps:$4 sm:$0xff]   ;;  %v2711_v13 = vld [vmem:[%s3470_s2 + $0x80] ss:$16 sps:$4 sm:$0xff]  }
  0x30   : > { %694 = vmatpush1.bf16.msra.mxu1 %v2724_v11  ;;  %v2727_v14 = vld [vmem:[%s3470_s2 + $0x28] ss:$16 sps:$4 sm:$0xff]   ;;  %v2712_v15 = vld [vmem:[%s3470_s2 + $0xa4] ss:$16 sps:$4 sm:$0xff]   ;;  %v2729_v16 = vld [vmem:[%s3470_s2 + $0x4c] ss:$16 sps:$4 sm:$0xff]  }
  0x31   : > { %695 = vmatprep.subr.bf16.mxu1 %v2725_v12  ;;  %v2714_v17 = vld [vmem:[%s3470_s2 + $0xa0] ss:$16 sps:$4 sm:$0xff]   ;;  %v2715_v18 = vld [vmem:[%s3470_s2 + $0xc4] ss:$16 sps:$4 sm:$0xff]   ;;  %v2731_v19 = vld [vmem:[%s3470_s2 + $0x48] ss:$16 sps:$4 sm:$0xff]  }
  0x32   : > { %623 = vmatpush1.bf16.msra.mxu0 %v2702_v4  ;;  %v2732_v20 = vld [vmem:[%s3470_s2 + $0x6c] ss:$16 sps:$4 sm:$0xff]   ;;  %v2717_v21 = vld [vmem:[%s3470_s2 + $0xc0] ss:$16 sps:$4 sm:$0xff]   ;;  %v2718_v22 = vld [vmem:[%s3470_s2 + $0xe4] ss:$16 sps:$4 sm:$0xff]  }
  0x33   : > { %624 = vmatprep.subr.bf16.mxu0 %v2703_v5  ;;  %v2734_v23 = vld [vmem:[%s3470_s2 + $0x68] ss:$16 sps:$4 sm:$0xff]   ;;  %v2736_v24 = vld [vmem:[%s3470_s2 + $0x8c] ss:$16 sps:$4 sm:$0xff]   ;;  %v2720_v25 = vld [vmem:[%s3470_s2 + $0xe0] ss:$16 sps:$4 sm:$0xff]  }
  0x34   : > { %696 = vmatpush1.bf16.msra.mxu1 %v2727_v14  ;;  %v2738_v26 = vld [vmem:[%s3470_s2 + $0x88] ss:$16 sps:$4 sm:$0xff]   ;;  %v2739_v27 = vld [vmem:[%s3470_s2 + $0xac] ss:$16 sps:$4 sm:$0xff]   ;;  %v2751_v28 = vld [vmem:[#allocation2 + $0x4] ss:$12 sps:$4 sm:$0xff]  }
  0x35   : > { %697 = vmatprep.subr.bf16.mxu1 %v2729_v16  ;;  %v2721_v29 = vld [vmem:[%s3076_s26] sm:$0xff]   ;;  %v2741_v30 = vld [vmem:[%s3470_s2 + $0xa8] ss:$16 sps:$4 sm:$0xff]   ;;  %v2743_v31 = vld [vmem:[%s3470_s2 + $0xcc] ss:$16 sps:$4 sm:$0xff]  }
  0x36   : > { %625 = vmatpush1.bf16.msra.mxu0 %v2705_v6  ;;  %v2749_v32 = vld [vmem:[#allocation2] ss:$12 sps:$4 sm:$0xff]   ;;  %v2754_v33 = vld [vmem:[#allocation2 + $0x1c] ss:$12 sps:$4 sm:$0xff]   ;;  %v2752_v36 = vld [vmem:[#allocation2 + $0x18] ss:$12 sps:$4 sm:$0xff]  }
  0x37   : > { %626 = vmatprep.subr.bf16.mxu0 %v2706_v7  ;;  %v2745_v34 = vld [vmem:[%s3470_s2 + $0xc8] ss:$16 sps:$4 sm:$0xff]   ;;  %v2746_v35 = vld [vmem:[%s3470_s2 + $0xec] ss:$16 sps:$4 sm:$0xff]   ;;  %v2757_v37 = vld [vmem:[#allocation2 + $0x34] ss:$12 sps:$4 sm:$0xff]  }
  0x38   : > { %698 = vmatpush1.bf16.msra.mxu1 %v2731_v19  ;;  %v2728_v38 = vld [vmem:[%s3076_s26 + $0x8] sm:$0xff]   ;;  %v2755_v40 = vld [vmem:[#allocation2 + $0x30] ss:$12 sps:$4 sm:$0xff]   ;;  %v2786_v50 = vld [vmem:[#allocation2 + $0xf8] ss:$12 sps:$4 sm:$0xff]  }
  0x39   : > { %699 = vmatprep.subr.bf16.mxu1 %v2732_v20  ;;  %v2748_v39 = vld [vmem:[%s3470_s2 + $0xe8] ss:$16 sps:$4 sm:$0xff]   ;;  %v2735_v45 = vld [vmem:[%s3076_s26 + $0x10] sm:$0xff]   ;;  %v2781_v46 = vld [vmem:[#allocation2 + $0xe0] ss:$12 sps:$4 sm:$0xff]  }
  0x3a   : > { %627 = vmatpush1.bf16.msra.mxu0 %v2708_v8  ;;  %v2776_v41 = vld [vmem:[#allocation2 + $0xc8] ss:$12 sps:$4 sm:$0xff]   ;;  %v2760_v42 = vld [vmem:[#allocation2 + $0x4c] ss:$12 sps:$4 sm:$0xff]   ;;  %v2763_v47 = vld [vmem:[#allocation2 + $0x64] ss:$12 sps:$4 sm:$0xff]  }
  0x3b   : > { %628 = vmatprep.subr.bf16.mxu0 %v2709_v9  ;;  %v2758_v43 = vld [vmem:[#allocation2 + $0x48] ss:$12 sps:$4 sm:$0xff]   ;;  %v2761_v48 = vld [vmem:[#allocation2 + $0x60] ss:$12 sps:$4 sm:$0xff]   ;;  %v2764_v52 = vld [vmem:[#allocation2 + $0x78] ss:$12 sps:$4 sm:$0xff]  }
  0x3c   : > { %700 = vmatpush1.bf16.msra.mxu1 %v2734_v23  ;;  %v2777_v44 = vld [vmem:[#allocation2 + $0x8] ss:$12 sps:$4 sm:$0xff]   ;;  %v2782_v49 = vld [vmem:[#allocation2 + $0x20] ss:$12 sps:$4 sm:$0xff]   ;;  %v2787_v53 = vld [vmem:[#allocation2 + $0x38] ss:$12 sps:$4 sm:$0xff]  }
  0x3d   : > { %701 = vmatprep.subr.bf16.mxu1 %v2736_v24  ;;  %v2766_v51 = vld [vmem:[#allocation2 + $0x7c] ss:$12 sps:$4 sm:$0xff]   ;;  %v2769_v56 = vld [vmem:[#allocation2 + $0x94] ss:$12 sps:$4 sm:$0xff]   ;;  %v2772_v59 = vld [vmem:[#allocation2 + $0xac] ss:$12 sps:$4 sm:$0xff]  }
  0x3e   : > { %629 = vmatpush1.bf16.msra.mxu0 %v2711_v13  ;;  %v2791_v54 = vld [vmem:[#allocation2 + $0x110] ss:$12 sps:$4 sm:$0xff]   ;;  %v2796_v60 = vld [vmem:[#allocation2 + $0x128] ss:$12 sps:$4 sm:$0xff]   ;;  %v2801_v63 = vld [vmem:[#allocation2 + $0x140] ss:$12 sps:$4 sm:$0xff]  }
  0x3f   : > { %630 = vmatprep.subr.bf16.mxu0 %v2712_v15  ;;  %v2742_v55 = vld [vmem:[%s3076_s26 + $0x18] sm:$0xff]   ;;  %v2797_v61 = vld [vmem:[#allocation2 + $0x68] ss:$12 sps:$4 sm:$0xff]   ;;  %v2775_v1 = vld [vmem:[#allocation2 + $0xc4] ss:$12 sps:$4 sm:$0xff]   ;;  %s2323_s26 = sshll.u32 %s3487_s28, 3 }
  0x40   : > { %702 = vmatpush1.bf16.msra.mxu1 %v2738_v26  ;;  %v2767_v57 = vld [vmem:[#allocation2 + $0x90] ss:$12 sps:$4 sm:$0xff]   ;;  %v2770_v62 = vld [vmem:[#allocation2 + $0xa8] ss:$12 sps:$4 sm:$0xff]   ;;  %v2773_v2 = vld [vmem:[#allocation2 + $0xc0] ss:$12 sps:$4 sm:$0xff]   ;;  %s365_s24 = scalar_lea.vmem %s3469_s1, %s2323_s26  ;;  %s3455_s12 = scalar_lea.vmem %s3477_s9, %s2323_s26 }
  0x41   : > { %703 = vmatprep.subr.bf16.mxu1 %v2739_v27  ;;  %v2792_v58 = vld [vmem:[#allocation2 + $0x50] ss:$12 sps:$4 sm:$0xff]   ;;  %v2778_v4 = vld [vmem:[#allocation2 + $0xd8] ss:$12 sps:$4 sm:$0xff]   ;;  %v2785_v5 = vld [vmem:[#allocation2 + $0xf4] ss:$12 sps:$4 sm:$0xff]  }
  0x42   : > { %631 = vmatpush1.bf16.msra.mxu0 %v2714_v17  ;;  %v2780_v3 = vld [vmem:[#allocation2 + $0xdc] ss:$12 sps:$4 sm:$0xff]   ;;  %v2790_v7 = vld [vmem:[#allocation2 + $0x10c] ss:$12 sps:$4 sm:$0xff]   ;;  %v2795_v9 = vld [vmem:[#allocation2 + $0x124] ss:$12 sps:$4 sm:$0xff]  }
  0x43   : > { %632 = vmatprep.subr.bf16.mxu0 %v2715_v18  ;;  %v2783_v6 = vld [vmem:[#allocation2 + $0xf0] ss:$12 sps:$4 sm:$0xff]   ;;  %v2788_v8 = vld [vmem:[#allocation2 + $0x108] ss:$12 sps:$4 sm:$0xff]   ;;  %v2793_v10 = vld [vmem:[#allocation2 + $0x120] ss:$12 sps:$4 sm:$0xff]  }
  0x44   : > { %704 = vmatpush1.bf16.msra.mxu1 %v2741_v30  ;;  %v2798_v11 = vld [vmem:[#allocation2 + $0x138] ss:$12 sps:$4 sm:$0xff]   ;;  %v2802_v12 = vld [vmem:[#allocation2 + $0x80] ss:$12 sps:$4 sm:$0xff]   ;;  %v2803_v14 = vld [vmem:[#allocation2 + $0x150] ss:$12 sps:$4 sm:$0xff]  }
  0x45   : > { %705 = vmatprep.subr.bf16.mxu1 %v2743_v31  ;;  %v2805_v13 = vld [vmem:[#allocation2 + $0x154] ss:$12 sps:$4 sm:$0xff]   ;;  %v2806_v15 = vld [vmem:[#allocation2 + $0x158] ss:$12 sps:$4 sm:$0xff]   ;;  %v2811_v19 = vld [vmem:[#allocation2 + $0x170] ss:$12 sps:$4 sm:$0xff]   ;;  %v416_v31 = vlaneseq }
  0x46   : > { %633 = vmatpush1.bf16.msra.mxu0 %v2717_v21  ;;  %v2807_v16 = vld [vmem:[#allocation2 + $0x98] ss:$12 sps:$4 sm:$0xff]   ;;  %v2808_v18 = vld [vmem:[#allocation2 + $0x168] ss:$12 sps:$4 sm:$0xff]   ;;  %v2812_v20 = vld [vmem:[#allocation2 + $0xb0] ss:$12 sps:$4 sm:$0xff]  }
  0x47   : > { %634 = vmatprep.subr.bf16.mxu0 %v2718_v22  ;;  %v2810_v17 = vld [vmem:[#allocation2 + $0x16c] ss:$12 sps:$4 sm:$0xff]   ;;  %v2815_v21 = vld [vmem:[#allocation2 + $0x184] ss:$12 sps:$4 sm:$0xff]   ;;  %v2816_v22 = vld [vmem:[#allocation2 + $0x248] ss:$12 sps:$4 sm:$0xff]  }
  0x48   : > { %706 = vmatpush1.bf16.msra.mxu1 %v2745_v34  ;;  %v942_v23 = vld [vmem:[%s365_s24] sm:$0xff]  ;;  %v943_v24 = vld [vmem:[%s365_s24 + $0x8] sm:$0xff]  ;;  %v945_v27 = vld [vmem:[%s365_s24 + $0x18] sm:$0xff] }
  0x49   : > { %707 = vmatprep.subr.bf16.mxu1 %v2746_v35  ;;  %953 = vperm.xlu0 %2695, %v942_v23   ;;  %v946_v26 = vld [vmem:[%s365_s24 + $0x20] sm:$0xff]  ;;  %v949_v30 = vld [vmem:[%s365_s24 + $0x38] sm:$0xff] }
  0x4a   : > { %635 = vmatpush1.bf16.msra.mxu0 %v2720_v25  ;;  %v944_v25 = vld [vmem:[%s365_s24 + $0x10] sm:$0xff]  ;;  %v414_v34 = vld [vmem:[%s3471_s3] sm:$0xf] }
  0x4b   : > { %1543 = vmatprep.subr.bf16.mxu0 %v2751_v28  ;;  %963 = vperm.xlu1 %2696, %v944_v25   ;;  %v948_v28 = vld [vmem:[%s365_s24 + $0x30] sm:$0xff] }
  0x4c   : > { %708 = vmatpush1.bf16.msra.mxu1 %v2748_v39  ;;  %v2823_v23 = vld [vmem:[#allocation2 + $0x1b0] ss:$12 sps:$4 sm:$0xff]  }
  0x4d   : > { %653 = vmatmul.mubr.bf16.vlgmr.msra.gmra.mrb[0].mxu0 %v2721_v29  ;;  %2485 = vmatprep.subr.bf16.mxu1 %v2776_v41 }
  0x4e   : > { %662 = vmatprep.mubr.bf16.mxu0 %v2944_v0  ;;  %1544 = vmatpush1.bf16.msra.mxu0 %v2749_v32  ;;  %v417_v32 = vshrl.u32 %v416_v31, 7 }
  0x4f   : > { %1545 = vmatprep.subr.bf16.mxu0 %v2754_v33  ;;  %726 = vmatmul.mubr.bf16.vlgmr.msra.gmra.mrb[0].mxu1 %v2721_v29  ;;  %v947_v29 = vld [vmem:[%s365_s24 + $0x28] sm:$0xff] }
  0x50   : > { %735 = vmatprep.mubr.bf16.mxu1 %v2944_v0  ;;  %2486 = vmatpush3.bf16.msra.mxu1 %v2777_v44  ;;  %v3169_v33 = vsub.s32 0, %v417_v32  ;;  %v3174_v35 = vsub.s32 1, %v417_v32 }
  0x51   : > { %2487 = vmatprep.subr.bf16.mxu1 %v2781_v46  ;;  %958 = vperm.xlu0 %2695, %v943_v24   ;;  %v2827_v24 = vld [vmem:[#allocation2 + $0x1b8] ss:$12 sps:$4 sm:$0xff]  }
  0x52   : > { %1546 = vmatpush1.bf16.msra.mxu0 %v2752_v36  ;;  %968 = vperm.xlu1 %2696, %v945_v27   ;;  %v3177_v36 = vrot.slane %v414_v34, %v3169_v33 }
  0x53   : > { %1547 = vmatprep.subr.bf16.mxu0 %v2757_v37  ;;  %v3180_v37 = vrot.slane %v414_v34, %v3174_v35 }
  0x54   : > { %2488 = vmatpush3.bf16.msra.mxu1 %v2782_v49 }
  0x55   : > { %663 = vmatmul.mubr.bf16.gmra.mrb[4].mxu0 %v2728_v38  ;;  %2489 = vmatprep.subr.bf16.mxu1 %v2786_v50 }
  0x56   : > { %672 = vmatprep.mubr.bf16.mxu0 %v2944_v0  ;;  %1548 = vmatpush1.bf16.msra.mxu0 %v2755_v40 }
  0x57   : > { %1549 = vmatprep.subr.bf16.mxu0 %v2760_v42  ;;  %736 = vmatmul.mubr.bf16.gmra.mrb[4].mxu1 %v2728_v38 }
  0x58   : > { %745 = vmatprep.mubr.bf16.mxu1 %v2944_v0  ;;  %2490 = vmatpush3.bf16.msra.mxu1 %v2787_v53 }
  0x59   : > { %2491 = vmatprep.subr.bf16.mxu1 %v2791_v54  ;;  %973 = vperm.xlu0 %2695, %v946_v26  }
  0x5a   : > { %1550 = vmatpush1.bf16.msra.mxu0 %v2758_v43  ;;  %978 = vperm.xlu1 %2696, %v947_v29   ;;  %v2830_v29 = vld [vmem:[#allocation2 + $0x1cc] ss:$12 sps:$4 sm:$0xff]  }
  0x5b   : > { %1551 = vmatprep.subr.bf16.mxu0 %v2763_v47 }
  0x5c   : > { %2492 = vmatpush3.bf16.msra.mxu1 %v2792_v58 }
  0x5d   : > { %673 = vmatmul.mubr.bf16.gmra.mrb[8].mxu0 %v2735_v45  ;;  %2493 = vmatprep.subr.bf16.mxu1 %v2796_v60  ;;  %v2821_v60 = vld [vmem:[#allocation2 + $0x260] ss:$12 sps:$4 sm:$0xff]  }
  0x5e   : > { %682 = vmatprep.mubr.bf16.mxu0 %v2944_v0  ;;  %1552 = vmatpush1.bf16.msra.mxu0 %v2761_v48  ;;  %v3186_v48 = vsub.s32 2, %v417_v32 }
  0x5f   : > { %1553 = vmatprep.subr.bf16.mxu0 %v2766_v51  ;;  %746 = vmatmul.mubr.bf16.gmra.mrb[8].mxu1 %v2735_v45  ;;  %v430_v51 = vsub.s32 3, %v417_v32 }
  0x60   : > { %755 = vmatprep.mubr.bf16.mxu1 %v2944_v0  ;;  %2494 = vmatpush3.bf16.msra.mxu1 %v2797_v61  ;;  %v2800_v0 = vld [vmem:[#allocation2 + $0x13c] ss:$12 sps:$4 sm:$0xff]   ;;  %v3190_v61 = vrot.slane %v414_v34, %v3186_v48 }
  0x61   : > { %2495 = vmatprep.subr.bf16.mxu1 %v2801_v63  ;;  %983 = vperm.xlu0 %2695, %v948_v28  }
  0x62   : > { %1554 = vmatpush1.bf16.msra.mxu0 %v2764_v52  ;;  %988 = vperm.xlu1 %2696, %v949_v30   ;;  %v2831_v30 = vld [vmem:[#allocation2 + $0x290] ss:$12 sps:$4 sm:$0xff]  }
  0x63   : > { %1555 = vmatprep.subr.bf16.mxu0 %v2769_v56  ;;  %v2817_v56 = vld [vmem:[#allocation2 + $0x188] ss:$12 sps:$4 sm:$0xff]  }
  0x64   : > { %2496 = vmatpush3.bf16.msra.mxu1 %v2802_v12 }
  0x65   : > { %683 = vmatmul.mubr.bf16.gmra.mrb[12].mxu0 %v2742_v55  ;;  %2497 = vmatprep.subr.bf16.mxu1 %v2806_v15 }
  0x66   : > { %1556 = vmatpush1.bf16.msra.mxu0 %v2767_v57 }
  0x67   : > { %1557 = vmatprep.subr.bf16.mxu0 %v2772_v59  ;;  %756 = vmatmul.mubr.bf16.gmra.mrb[12].mxu1 %v2742_v55  ;;  %v2813_v55 = vld [vmem:[#allocation2 + $0x180] ss:$12 sps:$4 sm:$0xff]   ;;  %v2820_v59 = vld [vmem:[#allocation2 + $0x19c] ss:$12 sps:$4 sm:$0xff]  }
  0x68   : > { %2498 = vmatpush3.bf16.msra.mxu1 %v2807_v16 }
  0x69   : > { %2499 = vmatprep.subr.bf16.mxu1 %v2811_v19 }
  0x6a   : > { %1558 = vmatpush1.bf16.msra.mxu0 %v2770_v62 }
  0x6b   : > { %1559 = vmatprep.subr.bf16.mxu0 %v2775_v1  ;;  %v3193_v1 = vrot.slane %v414_v34, %v430_v51  ;;  %v2835_v51 = vld [vmem:[#allocation2 + $0x1e4] ss:$12 sps:$4 sm:$0xff]  }
  0x6c   : > { %2500 = vmatpush3.bf16.msra.mxu1 %v2812_v20 }
  0x6d   : > { %2525 = vmatprep.subr.bf16.mxu1 %v2816_v22 }
  0x6e   : > { %1560 = vmatpush1.bf16.msra.mxu0 %v2773_v2 }
  0x6f   : > { %1561 = vmatprep.subr.bf16.mxu0 %v2780_v3 }
  0x72   : > { %1562 = vmatpush1.bf16.msra.mxu0 %v2778_v4 }
  0x73   : > { %1563 = vmatprep.subr.bf16.mxu0 %v2785_v5 }
  0x76   : > { %1564 = vmatpush1.bf16.msra.mxu0 %v2783_v6 }
  0x77   : > { %1565 = vmatprep.subr.bf16.mxu0 %v2790_v7  ;;  %v2818_v7 = vld [vmem:[#allocation2 + $0x198] ss:$12 sps:$4 sm:$0xff]  }
  0x7a   : > { %1566 = vmatpush1.bf16.msra.mxu0 %v2788_v8  ;;  %v2822_v8 = vld [vmem:[#allocation2 + $0x1a0] ss:$12 sps:$4 sm:$0xff]  }
  0x7b   : > { %1567 = vmatprep.subr.bf16.mxu0 %v2795_v9 }
  0x7e   : > { %1568 = vmatpush1.bf16.msra.mxu0 %v2793_v10 }
  0x7f   : > { %1569 = vmatprep.subr.bf16.mxu0 %v2800_v0  ;;  %v2825_v0 = vld [vmem:[#allocation2 + $0x1b4] ss:$12 sps:$4 sm:$0xff]  }
  0x82   : > { %1570 = vmatpush1.bf16.msra.mxu0 %v2798_v11  ;;  %v2826_v11 = vld [vmem:[#allocation2 + $0x278] ss:$12 sps:$4 sm:$0xff]  }
  0x83   : > { %1571 = vmatprep.subr.bf16.mxu0 %v2805_v13 }
  0x86   : > { %1572 = vmatpush1.bf16.msra.mxu0 %v2803_v14 }
  0x87   : > { %1573 = vmatprep.subr.bf16.mxu0 %v2810_v17 }
  0x8a   : > { %1574 = vmatpush1.bf16.msra.mxu0 %v2808_v18 }
  0x8b   : > { %1616 = vmatprep.subr.bf16.mxu0 %v2815_v21 }
 0x120   : > { %v654_v38 = vpop.f32.mrb[0].mxu0 }
 0x121   : > { %v655_v39 = vadd.f32 %v654_v38, %v3177_v36  ;;  %v656_v40 = vpop.f32.mrb[1].mxu0 }
 0x122   : > { %v657_v41 = vadd.f32 %v656_v40, %v3180_v37  ;;  %v658_v42 = vpop.f32.mrb[2].mxu0  ;;  %v727_v9 = vpop.f32.mrb[0].mxu1 }
 0x123   : > { %v659_v43 = vadd.f32 %v658_v42, %v3177_v36  ;;  %v660_v44 = vpop.f32.mrb[3].mxu0  ;;  %v766_v46 = vmax.f32 %v655_v39, 0.0  ;;  %v728_v12 = vadd.f32 %v727_v9, %v3190_v61  ;;  %v729_v13 = vpop.f32.mrb[1].mxu1  ;;  %v2840_v9 = vld [vmem:[#allocation2 + $0x1fc] ss:$12 sps:$4 sm:$0xff]  }
 0x124   : > { %v661_v45 = vadd.f32 %v660_v44, %v3180_v37  ;;  %v767_v49 = vmax.f32 %v657_v41, 0.0  ;;  %v730_v15 = vadd.f32 %v729_v13, %v3193_v1  ;;  %v731_v16 = vpop.f32.mrb[2].mxu1 }
 0x125   : > { %v770_v47 = vmax.f32 %v659_v43, 0.0  ;;  %v768_v18 = vmax.f32 %v728_v12, 0.0  ;;  %v732_v19 = vadd.f32 %v731_v16, %v3190_v61  ;;  %v733_v20 = vpop.f32.mrb[3].mxu1 }
 0x126   : > { %v771_v50 = vmax.f32 %v661_v45, 0.0  ;;  %v769_v25 = vmax.f32 %v730_v15, 0.0  ;;  %v734_v26 = vadd.f32 %v733_v20, %v3193_v1  ;;  %v2828_v45 = vld [vmem:[#allocation2 + $0x1c8] ss:$12 sps:$4 sm:$0xff]   ;;  %v2838_v20 = vld [vmem:[#allocation2 + $0x1f8] ss:$12 sps:$4 sm:$0xff]  }
 0x127   : > { %v798_v52 = vpack.c.bf16 %v770_v47, %v766_v46  ;;  %v772_v31 = vmax.f32 %v732_v19, 0.0  ;;  %v2832_v46 = vld [vmem:[#allocation2 + $0x1d0] ss:$12 sps:$4 sm:$0xff]  }
 0x128   : > { %v799_v53 = vpack.c.bf16 %v771_v50, %v767_v49  ;;  %v664_v54 = vpop.f32.mrb[4].mxu0  ;;  %v773_v38 = vmax.f32 %v734_v26, 0.0 }
 0x129   : > { %v665_v57 = vadd.f32 %v664_v54, %v3177_v36  ;;  %v666_v58 = vpop.f32.mrb[5].mxu0  ;;  %v3204_v42 = vpack.c.bf16 %v772_v31, %v768_v18 }
 0x12a   : > { %v667_v62 = vadd.f32 %v666_v58, %v3180_v37  ;;  %v668_v63 = vpop.f32.mrb[6].mxu0  ;;  %1575 = vmatprep.mubr.bf16.mxu0 %v799_v53  ;;  %1721 = vmatprep.mubr.bf16.mxu1 %v799_v53  ;;  %v3207_v47 = vpack.c.bf16 %v773_v38, %v769_v25  ;;  %v737_v49 = vpop.f32.mrb[4].mxu1  ;;  %v2845_v25 = vld [vmem:[#allocation2 + $0x214] ss:$12 sps:$4 sm:$0xff]  }
 0x12b   : > { %v774_v2 = vmax.f32 %v665_v57, 0.0  ;;  %v669_v3 = vadd.f32 %v668_v63, %v3177_v36  ;;  %v670_v4 = vpop.f32.mrb[7].mxu0  ;;  %1576 = vmatmul.mubr.bf16.vlgmr.msra.gmra.mrb[16].mxu0 %v798_v52  ;;  %1722 = vmatmul.mubr.bf16.vlgmr.msra.gmra.mrb[16].mxu1 %v798_v52  ;;  %v2836_v52 = vld [vmem:[#allocation2 + $0x2a8] ss:$12 sps:$4 sm:$0xff]   ;;  %v738_v53 = vadd.f32 %v737_v49, %v3190_v61  ;;  %v739_v54 = vpop.f32.mrb[5].mxu1 }
 0x12c   : > { %v775_v5 = vmax.f32 %v667_v62, 0.0  ;;  %v671_v6 = vadd.f32 %v670_v4, %v3180_v37  ;;  %1617 = vmatpush1.bf16.msra.mxu0 %v2813_v55  ;;  %2526 = vmatpush3.bf16.msra.mxu1 %v2817_v56  ;;  %v740_v56 = vadd.f32 %v739_v54, %v3193_v1  ;;  %v741_v57 = vpop.f32.mrb[6].mxu1  ;;  %v2837_v4 = vld [vmem:[#allocation2 + $0x1e8] ss:$12 sps:$4 sm:$0xff]  }
 0x12d   : > { %v778_v10 = vmax.f32 %v669_v3, 0.0  ;;  %1618 = vmatprep.subr.bf16.mxu0 %v2820_v59  ;;  %2527 = vmatprep.subr.bf16.mxu1 %v2821_v60  ;;  %v776_v59 = vmax.f32 %v738_v53, 0.0  ;;  %v742_v60 = vadd.f32 %v741_v57, %v3190_v61  ;;  %v743_v62 = vpop.f32.mrb[7].mxu1  ;;  %v2833_v3 = vld [vmem:[#allocation2 + $0x1e0] ss:$12 sps:$4 sm:$0xff]  }
 0x12e   : > { %v779_v14 = vmax.f32 %v671_v6, 0.0  ;;  %v744_v6 = vadd.f32 %v743_v62, %v3193_v1 }
 0x12f   : > { %v802_v17 = vpack.c.bf16 %v778_v10, %v774_v2  ;;  %v2841_v10 = vld [vmem:[#allocation2 + $0x2c0] ss:$12 sps:$4 sm:$0xff]  }
 0x130   : > { %v803_v21 = vpack.c.bf16 %v779_v14, %v775_v5  ;;  %1619 = vmatpush1.bf16.msra.mxu0 %v2818_v7  ;;  %v674_v22 = vpop.f32.mrb[8].mxu0  ;;  %2528 = vmatpush3.bf16.msra.mxu1 %v2822_v8  ;;  %v777_v5 = vmax.f32 %v740_v56, 0.0  ;;  %v781_v13 = vmax.f32 %v744_v6, 0.0 }
 0x131   : > { %v675_v27 = vadd.f32 %v674_v22, %v3177_v36  ;;  %v676_v28 = vpop.f32.mrb[9].mxu0  ;;  %1620 = vmatprep.subr.bf16.mxu0 %v2825_v0  ;;  %2529 = vmatprep.subr.bf16.mxu1 %v2826_v11  ;;  %v780_v0 = vmax.f32 %v742_v60, 0.0 }
 0x132   : > { %v677_v32 = vadd.f32 %v676_v28, %v3180_v37  ;;  %v678_v34 = vpop.f32.mrb[10].mxu0  ;;  %1729 = vmatprep.mubr.bf16.mxu1 %v803_v21  ;;  %1585 = vmatprep.mubr.bf16.mxu0 %v803_v21  ;;  %v2842_v21 = vld [vmem:[#allocation2 + $0x200] ss:$12 sps:$4 sm:$0xff]   ;;  %v3219_v22 = vpack.c.bf16 %v781_v13, %v777_v5  ;;  %v2858_v5 = vld [vmem:[#allocation2 + $0x25c] ss:$12 sps:$4 sm:$0xff]  }
 0x133   : > { %v782_v39 = vmax.f32 %v675_v27, 0.0  ;;  %v679_v40 = vadd.f32 %v678_v34, %v3177_v36  ;;  %v680_v41 = vpop.f32.mrb[11].mxu0  ;;  %1730 = vmatmul.mubr.bf16.gmra.mrb[20].mxu1 %v802_v17  ;;  %1586 = vmatmul.mubr.bf16.gmra.mrb[20].mxu0 %v802_v17  ;;  %v3216_v17 = vpack.c.bf16 %v780_v0, %v776_v59  ;;  %v2864_v0 = vld [vmem:[#allocation2 + $0x28c] ss:$12 sps:$4 sm:$0xff]   ;;  %v2870_v13 = vld [vmem:[#allocation2 + $0x2bc] ss:$12 sps:$4 sm:$0xff]  }
 0x134   : > { %v783_v43 = vmax.f32 %v677_v32, 0.0  ;;  %v681_v44 = vadd.f32 %v680_v41, %v3180_v37  ;;  %1621 = vmatpush1.bf16.msra.mxu0 %v2823_v23  ;;  %2530 = vmatpush3.bf16.msra.mxu1 %v2827_v24  ;;  %v747_v23 = vpop.f32.mrb[8].mxu1 }
 0x135   : > { %v786_v50 = vmax.f32 %v679_v40, 0.0  ;;  %1622 = vmatprep.subr.bf16.mxu0 %v2830_v29  ;;  %2531 = vmatprep.subr.bf16.mxu1 %v2831_v30  ;;  %v748_v26 = vadd.f32 %v747_v23, %v3190_v61  ;;  %v749_v27 = vpop.f32.mrb[9].mxu1  ;;  %v2847_v40 = vld [vmem:[#allocation2 + $0x218] ss:$12 sps:$4 sm:$0xff]   ;;  %v2882_v23 = vld [vmem:[%s3475_s7 + $0x10] sm:$0xff]  }
 0x136   : > { %v787_v55 = vmax.f32 %v681_v44, 0.0  ;;  %v750_v29 = vadd.f32 %v749_v27, %v3193_v1  ;;  %v751_v30 = vpop.f32.mrb[10].mxu1  ;;  %v2850_v44 = vld [vmem:[#allocation2 + $0x22c] ss:$12 sps:$4 sm:$0xff]  }
 0x137   : > { %v806_v58 = vpack.c.bf16 %v786_v50, %v782_v39  ;;  %v784_v31 = vmax.f32 %v748_v26, 0.0  ;;  %v752_v32 = vadd.f32 %v751_v30, %v3190_v61  ;;  %v753_v34 = vpop.f32.mrb[11].mxu1  ;;  %v2843_v39 = vld [vmem:[#allocation2 + $0x210] ss:$12 sps:$4 sm:$0xff]   ;;  %v2886_v26 = vld [vmem:[%s3475_s7 + $0x20] sm:$0xff]   ;;  %v2887_v27 = vld [vmem:[%s3475_s7 + $0x68] sm:$0xff]  }
 0x138   : > { %v807_v63 = vpack.c.bf16 %v787_v55, %v783_v43  ;;  %1623 = vmatpush1.bf16.msra.mxu0 %v2828_v45  ;;  %v684_v2 = vpop.f32.mrb[12].mxu0  ;;  %2532 = vmatpush3.bf16.msra.mxu1 %v2832_v46  ;;  %v785_v41 = vmax.f32 %v750_v29, 0.0  ;;  %v754_v43 = vadd.f32 %v753_v34, %v3193_v1  ;;  %v2851_v45 = vld [vmem:[#allocation2 + $0x2f0] ss:$12 sps:$4 sm:$0xff]  }
 0x139   : > { %v685_v7 = vadd.f32 %v684_v2, %v3177_v36  ;;  %v686_v8 = vpop.f32.mrb[13].mxu0  ;;  %1624 = vmatprep.subr.bf16.mxu0 %v2835_v51  ;;  %2533 = vmatprep.subr.bf16.mxu1 %v2836_v52  ;;  %v788_v46 = vmax.f32 %v752_v32, 0.0  ;;  %v2848_v51 = vld [vmem:[#allocation2 + $0x228] ss:$12 sps:$4 sm:$0xff]   ;;  %v2852_v52 = vld [vmem:[#allocation2 + $0x230] ss:$12 sps:$4 sm:$0xff]  }
 0x13a   : > { %v687_v11 = vadd.f32 %v686_v8, %v3180_v37  ;;  %v688_v12 = vpop.f32.mrb[14].mxu0  ;;  %1737 = vmatprep.mubr.bf16.mxu1 %v807_v63  ;;  %1595 = vmatprep.mubr.bf16.mxu0 %v807_v63  ;;  %v789_v49 = vmax.f32 %v754_v43, 0.0  ;;  %v757_v54 = vpop.f32.mrb[12].mxu1  ;;  %v2855_v55 = vld [vmem:[#allocation2 + $0x244] ss:$12 sps:$4 sm:$0xff]  }
 0x13b   : > { %v790_v14 = vmax.f32 %v685_v7, 0.0  ;;  %v689_v15 = vadd.f32 %v688_v12, %v3177_v36  ;;  %v690_v16 = vpop.f32.mrb[15].mxu0  ;;  %1738 = vmatmul.mubr.bf16.gmra.mrb[24].mxu1 %v806_v58  ;;  %1596 = vmatmul.mubr.bf16.gmra.mrb[24].mxu0 %v806_v58  ;;  %v2846_v36 = vld [vmem:[#allocation2 + $0x2d8] ss:$12 sps:$4 sm:$0xff]   ;;  %v3225_v50 = vpack.c.bf16 %v788_v46, %v784_v31  ;;  %v758_v56 = vadd.f32 %v757_v54, %v3190_v61  ;;  %v759_v57 = vpop.f32.mrb[13].mxu1  ;;  %v2889_v29 = vld [vmem:[%s3475_s7 + $0x70] sm:$0xff]  }
 0x13c   : > { %v791_v18 = vmax.f32 %v687_v11, 0.0  ;;  %v691_v19 = vadd.f32 %v690_v16, %v3180_v37  ;;  %1625 = vmatpush1.bf16.msra.mxu0 %v2833_v3  ;;  %2534 = vmatpush3.bf16.msra.mxu1 %v2837_v4  ;;  %v809_v53 = vpack.c.bf16 %v789_v49, %v785_v41  ;;  %v760_v58 = vadd.f32 %v759_v57, %v3193_v1  ;;  %v761_v59 = vpop.f32.mrb[14].mxu1  ;;  %v2853_v2 = vld [vmem:[#allocation2 + $0x240] ss:$12 sps:$4 sm:$0xff]   ;;  %v2867_v11 = vld [vmem:[#allocation2 + $0x2a4] ss:$12 sps:$4 sm:$0xff]  }
 0x13d   : > { %v794_v24 = vmax.f32 %v689_v15, 0.0  ;;  %1626 = vmatprep.subr.bf16.mxu0 %v2840_v9  ;;  %2535 = vmatprep.subr.bf16.mxu1 %v2841_v10  ;;  %v792_v60 = vmax.f32 %v758_v56, 0.0  ;;  %v762_v62 = vadd.f32 %v761_v59, %v3190_v61  ;;  %v763_v63 = vpop.f32.mrb[15].mxu1  ;;  %v2856_v9 = vld [vmem:[#allocation2 + $0x258] ss:$12 sps:$4 sm:$0xff]   ;;  %v2890_v30 = vld [vmem:[%s3475_s7 + $0x30] sm:$0xff]   ;;  %v3300_v59 = vpop.permute.xlu0 %953 }
 0x13e   : > { %v795_v28 = vmax.f32 %v691_v19, 0.0  ;;  %v793_v3 = vmax.f32 %v760_v58, 0.0  ;;  %v764_v4 = vadd.f32 %v763_v63, %v3193_v1  ;;  %v2861_v61 = vld [vmem:[#allocation2 + $0x274] ss:$12 sps:$4 sm:$0xff]   ;;  %v2859_v10 = vld [vmem:[#allocation2 + $0x270] ss:$12 sps:$4 sm:$0xff]  }
 0x13f   : > { %v810_v37 = vpack.c.bf16 %v794_v24, %v790_v14  ;;  %v796_v6 = vmax.f32 %v762_v62, 0.0  ;;  %v2862_v1 = vld [vmem:[#allocation2 + $0x288] ss:$12 sps:$4 sm:$0xff]   ;;  %v2865_v12 = vld [vmem:[#allocation2 + $0x2a0] ss:$12 sps:$4 sm:$0xff]   ;;  %v2883_v24 = vld [vmem:[%s3475_s7 + $0x58] sm:$0xff]  }
 0x140   : > { %v811_v38 = vpack.c.bf16 %v795_v28, %v791_v18  ;;  %1627 = vmatpush1.bf16.msra.mxu0 %v2838_v20  ;;  %2536 = vmatpush3.bf16.msra.mxu1 %v2842_v21  ;;  %v797_v7 = vmax.f32 %v764_v4, 0.0  ;;  %v2868_v14 = vld [vmem:[#allocation2 + $0x2b8] ss:$12 sps:$4 sm:$0xff]   ;;  %v2873_v15 = vld [vmem:[#allocation2 + $0x2d4] ss:$12 sps:$4 sm:$0xff]   ;;  %v2888_v28 = vld [vmem:[%s3475_s7 + $0x28] sm:$0xff]  }
 0x141   : > { %1628 = vmatprep.subr.bf16.mxu0 %v2845_v25  ;;  %2537 = vmatprep.subr.bf16.mxu1 %v2846_v36  ;;  %v812_v8 = vpack.c.bf16 %v796_v6, %v792_v60  ;;  %v2871_v16 = vld [vmem:[#allocation2 + $0x2d0] ss:$12 sps:$4 sm:$0xff]   ;;  %v2876_v18 = vld [vmem:[#allocation2 + $0x2ec] ss:$12 sps:$4 sm:$0xff]   ;;  %v2874_v19 = vld [vmem:[#allocation2 + $0x2e8] ss:$12 sps:$4 sm:$0xff]   ;;  %v3308_v6 = vpop.permute.xlu0 %958 }
 0x142   : > { %1745 = vmatprep.mubr.bf16.mxu1 %v811_v38  ;;  %1605 = vmatprep.mubr.bf16.mxu0 %v811_v38  ;;  %v2877_v20 = vld [vmem:[%s3475_s7 + $0x40] sm:$0xff]   ;;  %v2884_v25 = vld [vmem:[%s3475_s7 + $0x18] sm:$0xff]  }
 0x143   : > { %1746 = vmatmul.mubr.bf16.gmra.mrb[28].mxu1 %v810_v37  ;;  %1606 = vmatmul.mubr.bf16.gmra.mrb[28].mxu0 %v810_v37  ;;  %v2878_v21 = vld [vmem:[%s3475_s7] sm:$0xff]   ;;  %v2891_v37 = vld [vmem:[%s3475_s7 + $0x78] sm:$0xff]  }
 0x144   : > { %1629 = vmatpush1.bf16.msra.mxu0 %v2843_v39  ;;  %2538 = vmatpush3.bf16.msra.mxu1 %v2847_v40  ;;  %v2885_v36 = vld [vmem:[%s3475_s7 + $0x60] sm:$0xff]   ;;  %v2892_v31 = vld [vmem:[%s3475_s7 + $0x38] sm:$0xff]  }
 0x145   : > { %1630 = vmatprep.subr.bf16.mxu0 %v2850_v44  ;;  %2539 = vmatprep.subr.bf16.mxu1 %v2851_v45  ;;  %v3292_v32 = vld [vmem:[%s3475_s7 + $0x80] sm:$0xff]  }
 0x146   : > { %1786 = vmatprep.mubr.bf16.mxu1 %v3207_v47  ;;  %1648 = vmatprep.mubr.bf16.mxu0 %v3207_v47  ;;  %v813_v47 = vpack.c.bf16 %v797_v7, %v793_v3  ;;  %v3298_v58 = vld [vmem:[%s3473_s5] sm:$0x7] }
 0x147   : > { %v1003_v63 = vrot.slane %v3298_v58, %v3186_v48 }
 0x148   : > { %1631 = vmatpush1.bf16.msra.mxu0 %v2848_v51  ;;  %2540 = vmatpush3.bf16.msra.mxu1 %v2852_v52 }
 0x149   : > { %1632 = vmatprep.subr.bf16.mxu0 %v2855_v55  ;;  %2565 = vmatprep.subr.bf16.mxu1 %v2877_v20  ;;  %v1009_v7 = vmul.f32 %v1003_v63, %v3300_v59 }
 0x14b   : > { %1787 = vmatmul.mubr.bf16.vlgmr.msra.gmra.mrb[32].mxu1 %v3204_v42 }
 0x14c   : > { %1633 = vmatpush1.bf16.msra.mxu0 %v2853_v2  ;;  %1794 = vmatprep.mubr.bf16.mxu1 %v3219_v22 }
 0x14d   : > { %1634 = vmatprep.subr.bf16.mxu0 %v2858_v5  ;;  %2566 = vmatpush3.bf16.msra.mxu1 %v2878_v21 }
 0x150   : > { %1635 = vmatpush1.bf16.msra.mxu0 %v2856_v9  ;;  %v3316_v9 = vld [vmem:[%s3474_s6] sm:$0x7] }
 0x151   : > { %1636 = vmatprep.subr.bf16.mxu0 %v2861_v61 }
 0x153   : > { %1795 = vmatmul.mubr.bf16.gmra.mrb[36].mxu1 %v3216_v17 }
 0x154   : > { %1637 = vmatpush1.bf16.msra.mxu0 %v2859_v10  ;;  %1802 = vmatprep.mubr.bf16.mxu1 %v809_v53 }
 0x155   : > { %1638 = vmatprep.subr.bf16.mxu0 %v2864_v0 }
 0x158   : > { %1639 = vmatpush1.bf16.msra.mxu0 %v2862_v1 }
 0x159   : > { %1640 = vmatprep.subr.bf16.mxu0 %v2867_v11  ;;  %v3321_v11 = vrot.slane %v3316_v9, %v3186_v48 }
 0x15b   : > { %1803 = vmatmul.mubr.bf16.gmra.mrb[40].mxu1 %v3225_v50 }
 0x15c   : > { %1641 = vmatpush1.bf16.msra.mxu0 %v2865_v12  ;;  %1810 = vmatprep.mubr.bf16.mxu1 %v813_v47 }
 0x15d   : > { %1642 = vmatprep.subr.bf16.mxu0 %v2870_v13 }
 0x160   : > { %1643 = vmatpush1.bf16.msra.mxu0 %v2868_v14 }
 0x161   : > { %1644 = vmatprep.subr.bf16.mxu0 %v2873_v15 }
 0x163   : > { %1811 = vmatmul.mubr.bf16.gmra.mrb[44].mxu1 %v812_v8 }
 0x164   : > { %1645 = vmatpush1.bf16.msra.mxu0 %v2871_v16 }
 0x165   : > { %1646 = vmatprep.subr.bf16.mxu0 %v2876_v18 }
 0x168   : > { %1647 = vmatpush1.bf16.msra.mxu0 %v2874_v19 }
 0x16b   : > { %1649 = vmatmul.mubr.bf16.vlgmr.msra.gmra.mrb[16].mxu0 %v3204_v42  ;;  %v2879_v42 = vld [vmem:[%s3475_s7 + $0x48] sm:$0xff]  }
 0x16c   : > { %1658 = vmatprep.mubr.bf16.mxu0 %v3219_v22  ;;  %2567 = vmatprep.subr.bf16.mxu1 %v2879_v42  ;;  %v2881_v22 = vld [vmem:[%s3475_s7 + $0x50] sm:$0xff]  }
 0x173   : > { %1659 = vmatmul.mubr.bf16.gmra.mrb[20].mxu0 %v3216_v17  ;;  %v2880_v17 = vld [vmem:[%s3475_s7 + $0x8] sm:$0xff]  }
 0x174   : > { %1668 = vmatprep.mubr.bf16.mxu0 %v809_v53  ;;  %2568 = vmatpush3.bf16.msra.mxu1 %v2880_v17 }
 0x175   : > { %2569 = vmatprep.subr.bf16.mxu1 %v2881_v22 }
 0x178   : > { %2570 = vmatpush3.bf16.msra.mxu1 %v2882_v23 }
 0x179   : > { %2571 = vmatprep.subr.bf16.mxu1 %v2883_v24 }
 0x17b   : > { %1669 = vmatmul.mubr.bf16.gmra.mrb[24].mxu0 %v3225_v50 }
 0x17c   : > { %1678 = vmatprep.mubr.bf16.mxu0 %v813_v47  ;;  %2572 = vmatpush3.bf16.msra.mxu1 %v2884_v25  ;;  %v1012_v47 = vmul.f32 %v1003_v63, %v3308_v6 }
 0x17d   : > { %2573 = vmatprep.subr.bf16.mxu1 %v2885_v36 }
 0x180   : > { %2574 = vmatpush3.bf16.msra.mxu1 %v2886_v26 }
 0x181   : > { %2575 = vmatprep.subr.bf16.mxu1 %v2887_v27  ;;  %v3329_v27 = vpop.permute.xlu0 %973 }
 0x183   : > { %1679 = vmatmul.mubr.bf16.gmra.mrb[28].mxu0 %v812_v8  ;;  %v3311_v8 = vpop.permute.xlu1 %963 }
 0x184   : > { %2576 = vmatpush3.bf16.msra.mxu1 %v2888_v28  ;;  %v1015_v19 = vmul.f32 %v1003_v63, %v3311_v8 }
 0x185   : > { %2577 = vmatprep.subr.bf16.mxu1 %v2889_v29 }
 0x187   : > { %v3323_v18 = vpop.permute.xlu1 %968 }
 0x188   : > { %2578 = vmatpush3.bf16.msra.mxu1 %v2890_v30  ;;  %v1018_v42 = vmul.f32 %v1003_v63, %v3323_v18 }
 0x189   : > { %2579 = vmatprep.subr.bf16.mxu1 %v2891_v37 }
 0x18c   : > { %2580 = vmatpush3.bf16.msra.mxu1 %v2892_v31 }
 0x18d   : > { %2617 = vmatprep.subr.bf16.mxu1 %v3292_v32 }
 0x1fe   : > { %v2501_v34 = vpop.f32.mrb[16].mxu1 }
 0x1ff   : > { %v2502_v38 = vpop.f32.mrb[17].mxu1 }
 0x200   : > { %v2503_v39 = vadd.f32 %v2502_v38, %v2501_v34  ;;  %v2504_v40 = vpop.f32.mrb[18].mxu1  ;;  %v3333_v34 = vpop.permute.xlu1 %978 }
 0x201   : > { %v2505_v41 = vpop.f32.mrb[19].mxu1 }
 0x202   : > { %v2506_v43 = vadd.f32 %v2505_v41, %v2504_v40  ;;  %v1724_v0 = vadd.f32 %v2503_v39, %v1009_v7  ;;  %v1021_v39 = vmul.f32 %v1003_v63, %v3329_v27  ;;  %v1024_v41 = vmul.f32 %v1003_v63, %v3333_v34 }
 0x204   : > { %v1727_v14 = vadd.f32 %v2506_v43, %v1012_v47 }
 0x206   : > { %v2507_v44 = vpop.f32.mrb[20].mxu1 }
 0x207   : > { %v2508_v45 = vpop.f32.mrb[21].mxu1 }
 0x208   : > { %v2509_v46 = vadd.f32 %v2508_v45, %v2507_v44  ;;  %v2510_v49 = vpop.f32.mrb[22].mxu1 }
 0x209   : > { %v2511_v50 = vpop.f32.mrb[23].mxu1 }
 0x20a   : > { %v2512_v51 = vadd.f32 %v2511_v50, %v2510_v49  ;;  %v1732_v25 = vadd.f32 %v2509_v46, %v1015_v19  ;;  %v3356_v19 = vrot.slane %v3298_v58, %v3174_v35 }
 0x20c   : > { %v1735_v30 = vadd.f32 %v2512_v51, %v1018_v42 }
 0x20e   : > { %v2513_v52 = vpop.f32.mrb[24].mxu1 }
 0x20f   : > { %v2514_v53 = vpop.f32.mrb[25].mxu1 }
 0x210   : > { %v2515_v54 = vadd.f32 %v2514_v53, %v2513_v52  ;;  %v2516_v55 = vpop.f32.mrb[26].mxu1  ;;  %v3339_v53 = vpop.permute.xlu0 %983 }
 0x211   : > { %v2517_v56 = vpop.f32.mrb[27].mxu1  ;;  %v1027_v47 = vmul.f32 %v1003_v63, %v3339_v53 }
 0x212   : > { %v2518_v57 = vadd.f32 %v2517_v56, %v2516_v55  ;;  %v1740_v50 = vadd.f32 %v2515_v54, %v1021_v39 }
 0x216   : > { %v2519_v60 = vpop.f32.mrb[28].mxu1 }
 0x217   : > { %v2520_v62 = vpop.f32.mrb[29].mxu1 }
 0x218   : > { %v3304_v2 = vadd.f32 %v2520_v62, %v2519_v60  ;;  %v2522_v3 = vpop.f32.mrb[30].mxu1  ;;  %v1743_v62 = vadd.f32 %v2518_v57, %v1024_v41 }
 0x219   : > { %v2523_v4 = vpop.f32.mrb[31].mxu1 }
 0x21a   : > { %v3306_v5 = vadd.f32 %v2523_v4, %v2522_v3  ;;  %v3343_v4 = vpop.permute.xlu1 %988  ;;  %v1748_v57 = vadd.f32 %v3304_v2, %v1027_v47  ;;  %v1017_v47 = vmul.f32 %v3356_v19, %v3323_v18 }
 0x21e   : > { %v2541_v61 = vpop.f32.mrb[32].mxu1 }
 0x21f   : > { %v2542_v10 = vpop.f32.mrb[33].mxu1 }
 0x220   : > { %v2543_v1 = vadd.f32 %v2542_v10, %v2541_v61  ;;  %v2544_v12 = vpop.f32.mrb[34].mxu1  ;;  %v1030_v10 = vmul.f32 %v1003_v63, %v3343_v4 }
 0x221   : > { %v2545_v13 = vpop.f32.mrb[35].mxu1 }
 0x222   : > { %v1789_v15 = vadd.f32 %v2543_v1, %v1724_v0  ;;  %v2546_v16 = vadd.f32 %v2545_v13, %v2544_v12  ;;  %v3351_v1 = vrot.slane %v3298_v58, %v3169_v33  ;;  %v1751_v63 = vadd.f32 %v3306_v5, %v1030_v10 }
 0x223   : > { %v1008_v5 = vmul.f32 %v3356_v19, %v3300_v59 }
 0x224   : > { %v1838_v20 = vadd.f32 %v3321_v11, %v1789_v15  ;;  %v1792_v21 = vadd.f32 %v2546_v16, %v1727_v14 }
 0x226   : > { %v1841_v17 = vadd.f32 %v3321_v11, %v1792_v21  ;;  %v2547_v22 = vpop.f32.mrb[36].mxu1  ;;  %v1862_v48 = vmax.f32 %v1838_v20, 0.0 }
 0x227   : > { %v2548_v23 = vpop.f32.mrb[37].mxu1 }
 0x228   : > { %v1865_v24 = vmax.f32 %v1841_v17, 0.0  ;;  %v2549_v36 = vadd.f32 %v2548_v23, %v2547_v22  ;;  %v2550_v26 = vpop.f32.mrb[38].mxu1  ;;  %v1007_v22 = vmul.f32 %v3351_v1, %v3300_v59 }
 0x229   : > { %v2551_v28 = vpop.f32.mrb[39].mxu1 }
 0x22a   : > { %v1797_v29 = vadd.f32 %v2549_v36, %v1732_v25  ;;  %v2552_v37 = vadd.f32 %v2551_v28, %v2550_v26  ;;  %v3331_v31 = vpack.c.bf16 %v1865_v24, %v1862_v48  ;;  %v3366_v48 = vrot.slane %v3316_v9, %v3169_v33 }
 0x22b   : > { %v3373_v25 = vrot.slane %v3316_v9, %v3174_v35  ;;  %v1010_v28 = vmul.f32 %v3351_v1, %v3308_v6 }
 0x22c   : > { %v1844_v38 = vadd.f32 %v3321_v11, %v1797_v29  ;;  %v1800_v40 = vadd.f32 %v2552_v37, %v1735_v30 }
 0x22e   : > { %v1847_v43 = vadd.f32 %v3321_v11, %v1800_v40  ;;  %v2553_v44 = vpop.f32.mrb[40].mxu1  ;;  %v1868_v46 = vmax.f32 %v1844_v38, 0.0 }
 0x22f   : > { %v2554_v45 = vpop.f32.mrb[41].mxu1 }
 0x230   : > { %v1871_v49 = vmax.f32 %v1847_v43, 0.0  ;;  %v2555_v51 = vadd.f32 %v2554_v45, %v2553_v44  ;;  %v2556_v52 = vpop.f32.mrb[42].mxu1  ;;  %v1013_v43 = vmul.f32 %v3351_v1, %v3311_v8 }
 0x231   : > { %v2557_v55 = vpop.f32.mrb[43].mxu1 }
 0x232   : > { %v3341_v56 = vpack.c.bf16 %v1871_v49, %v1868_v46  ;;  %v1805_v60 = vadd.f32 %v2555_v51, %v1740_v50  ;;  %v2558_v3 = vadd.f32 %v2557_v55, %v2556_v52  ;;  %v1014_v51 = vmul.f32 %v3356_v19, %v3311_v8  ;;  %v2894_v8 = vld [vmem:[%s3475_s7 + $0x88] sm:$0xff]  }
 0x234   : > { %v1850_v7 = vadd.f32 %v3321_v11, %v1805_v60  ;;  %v1808_v61 = vadd.f32 %v2558_v3, %v1743_v62  ;;  %v1016_v62 = vmul.f32 %v3351_v1, %v3323_v18 }
 0x236   : > { %v1853_v54 = vadd.f32 %v3321_v11, %v1808_v61  ;;  %v2559_v0 = vpop.f32.mrb[44].mxu1  ;;  %v1874_v13 = vmax.f32 %v1850_v7, 0.0 }
 0x237   : > { %v2560_v12 = vpop.f32.mrb[45].mxu1 }
 0x238   : > { %v1877_v14 = vmax.f32 %v1853_v54, 0.0  ;;  %v2561_v15 = vadd.f32 %v2560_v12, %v2559_v0  ;;  %v2562_v16 = vpop.f32.mrb[46].mxu1 }
 0x239   : > { %v2563_v20 = vpop.f32.mrb[47].mxu1 }
 0x23a   : > { %v1813_v21 = vadd.f32 %v2561_v15, %v1748_v57  ;;  %v2564_v42 = vadd.f32 %v2563_v20, %v2562_v16  ;;  %v3359_v17 = vpack.c.bf16 %v1877_v14, %v1874_v13  ;;  %v1019_v16 = vmul.f32 %v3351_v1, %v3329_v27  ;;  %v2895_v20 = vld [vmem:[%s3475_s7 + $0x90] sm:$0xff]  }
 0x23c   : > { %v1856_v23 = vadd.f32 %v3321_v11, %v1813_v21  ;;  %v1816_v2 = vadd.f32 %v2564_v42, %v1751_v63 }
 0x23e   : > { %v1859_v58 = vadd.f32 %v3321_v11, %v1816_v2  ;;  %v1650_v24 = vpop.f32.mrb[16].mxu0  ;;  %v1880_v29 = vmax.f32 %v1856_v23, 0.0  ;;  %v1011_v11 = vmul.f32 %v3356_v19, %v3308_v6 }
 0x23f   : > { %v2641_v36 = vadd.f32 %v1650_v24, %v1007_v22  ;;  %v1652_v26 = vpop.f32.mrb[17].mxu0  ;;  %v1020_v22 = vmul.f32 %v3356_v19, %v3329_v27  ;;  %v2896_v27 = vld [vmem:[%s3475_s7 + $0x98] sm:$0xff]  }
 0x240   : > { %v1883_v30 = vmax.f32 %v1859_v58, 0.0  ;;  %v2642_v37 = vadd.f32 %v1652_v26, %v1008_v5  ;;  %v1654_v33 = vpop.f32.mrb[18].mxu0 }
 0x241   : > { %v1836_v38 = vadd.f32 %v2641_v36, %v3366_v48  ;;  %v2643_v39 = vadd.f32 %v1654_v33, %v1010_v28  ;;  %v1656_v59 = vpop.f32.mrb[19].mxu0  ;;  %v1023_v36 = vmul.f32 %v3356_v19, %v3333_v34 }
 0x242   : > { %v1837_v40 = vadd.f32 %v2642_v37, %v3373_v25  ;;  %v2644_v35 = vadd.f32 %v1656_v59, %v1011_v11  ;;  %v3381_v9 = vpack.c.bf16 %v1883_v30, %v1880_v29 }
 0x243   : > { %v1839_v41 = vadd.f32 %v2643_v39, %v3366_v48  ;;  %v1860_v45 = vmax.f32 %v1836_v38, 0.0 }
 0x244   : > { %v1840_v44 = vadd.f32 %v2644_v35, %v3373_v25  ;;  %v1861_v49 = vmax.f32 %v1837_v40, 0.0  ;;  %v2897_v40 = vld [vmem:[%s3475_s7 + $0xa0] sm:$0xff]   ;;  %v1026_v35 = vmul.f32 %v3356_v19, %v3339_v53 }
 0x245   : > { %v1863_v46 = vmax.f32 %v1839_v41, 0.0 }
 0x246   : > { %v1864_v6 = vmax.f32 %v1840_v44, 0.0  ;;  %v1660_v50 = vpop.f32.mrb[20].mxu0 }
 0x247   : > { %v1884_v52 = vpack.c.bf16 %v1863_v46, %v1860_v45  ;;  %v2645_v55 = vadd.f32 %v1660_v50, %v1013_v43  ;;  %v1662_v60 = vpop.f32.mrb[21].mxu0  ;;  %v1028_v45 = vmul.f32 %v3351_v1, %v3343_v4  ;;  %v1029_v50 = vmul.f32 %v3356_v19, %v3343_v4 }
 0x248   : > { %v2646_v3 = vadd.f32 %v1662_v60, %v1014_v51  ;;  %v1664_v7 = vpop.f32.mrb[22].mxu0  ;;  %v1885_v61 = vpack.c.bf16 %v1864_v6, %v1861_v49 }
 0x249   : > { %v1842_v10 = vadd.f32 %v2645_v55, %v3366_v48  ;;  %v2647_v54 = vadd.f32 %v1664_v7, %v1016_v62  ;;  %v1666_v0 = vpop.f32.mrb[23].mxu0 }
 0x24a   : > { %v1843_v12 = vadd.f32 %v2646_v3, %v3373_v25  ;;  %v2648_v13 = vadd.f32 %v1666_v0, %v1017_v47  ;;  %2127 = vmatprep.mubr.bf16.mxu1 %v1885_v61  ;;  %v2898_v3 = vld [vmem:[%s3475_s7 + $0xa8] sm:$0xff]  }
 0x24b   : > { %v1845_v57 = vadd.f32 %v2647_v54, %v3366_v48  ;;  %2128 = vmatmul.mubr.bf16.vlgmr.msra.gmra.mrb[48].mxu1 %v1884_v52  ;;  %v1866_v18 = vmax.f32 %v1842_v10, 0.0  ;;  %v2899_v10 = vld [vmem:[%s3475_s7 + $0xb0] sm:$0xff]  }
 0x24c   : > { %v1846_v14 = vadd.f32 %v2648_v13, %v3373_v25  ;;  %2618 = vmatpush3.bf16.msra.mxu1 %v3292_v32  ;;  %v1867_v63 = vmax.f32 %v1843_v12, 0.0  ;;  %v1022_v32 = vmul.f32 %v3351_v1, %v3333_v34  ;;  %v1025_v34 = vmul.f32 %v3351_v1, %v3339_v53 }
 0x24d   : > { %v1869_v15 = vmax.f32 %v1845_v57, 0.0  ;;  %2619 = vmatprep.subr.bf16.mxu1 %v2894_v8 }
 0x24e   : > { %v1870_v21 = vmax.f32 %v1846_v14, 0.0  ;;  %v1670_v42 = vpop.f32.mrb[24].mxu0 }
 0x24f   : > { %v2649_v23 = vadd.f32 %v1670_v42, %v1019_v16  ;;  %v1672_v2 = vpop.f32.mrb[25].mxu0  ;;  %v1887_v58 = vpack.c.bf16 %v1869_v15, %v1866_v18 }
 0x250   : > { %v2650_v24 = vadd.f32 %v1672_v2, %v1020_v22  ;;  %2620 = vmatpush3.bf16.msra.mxu1 %v2894_v8  ;;  %v1674_v5 = vpop.f32.mrb[26].mxu0  ;;  %v1888_v26 = vpack.c.bf16 %v1870_v21, %v1867_v63 }
 0x251   : > { %v1848_v28 = vadd.f32 %v2649_v23, %v3366_v48  ;;  %v2651_v29 = vadd.f32 %v1674_v5, %v1022_v32  ;;  %v1676_v30 = vpop.f32.mrb[27].mxu0  ;;  %2621 = vmatprep.subr.bf16.mxu1 %v2895_v20 }
 0x252   : > { %v1849_v37 = vadd.f32 %v2650_v24, %v3373_v25  ;;  %v2652_v33 = vadd.f32 %v1676_v30, %v1023_v36  ;;  %2135 = vmatprep.mubr.bf16.mxu1 %v1888_v26 }
 0x253   : > { %v1851_v11 = vadd.f32 %v2651_v29, %v3366_v48  ;;  %2136 = vmatmul.mubr.bf16.gmra.mrb[52].mxu1 %v1887_v58  ;;  %v1872_v39 = vmax.f32 %v1848_v28, 0.0  ;;  %v2458_v28 = vld [vmem:[%s3476_s8] ss:$0 sm:$0xff] }
 0x254   : > { %v1852_v38 = vadd.f32 %v2652_v33, %v3373_v25  ;;  %2622 = vmatpush3.bf16.msra.mxu1 %v2895_v20  ;;  %v1873_v41 = vmax.f32 %v1849_v37, 0.0 }
 0x255   : > { %v1875_v59 = vmax.f32 %v1851_v11, 0.0  ;;  %2623 = vmatprep.subr.bf16.mxu1 %v2896_v27 }
 0x256   : > { %v1876_v43 = vmax.f32 %v1852_v38, 0.0  ;;  %v1680_v44 = vpop.f32.mrb[28].mxu0 }
 0x257   : > { %v2653_v46 = vadd.f32 %v1680_v44, %v1025_v34  ;;  %v1682_v49 = vpop.f32.mrb[29].mxu0  ;;  %v1890_v6 = vpack.c.bf16 %v1875_v59, %v1872_v39 }
 0x258   : > { %v2654_v51 = vadd.f32 %v1682_v49, %v1026_v35  ;;  %2624 = vmatpush3.bf16.msra.mxu1 %v2896_v27  ;;  %v1684_v52 = vpop.f32.mrb[30].mxu0  ;;  %v1891_v55 = vpack.c.bf16 %v1876_v43, %v1873_v41 }
 0x259   : > { %v1854_v60 = vadd.f32 %v2653_v46, %v3366_v48  ;;  %v2655_v62 = vadd.f32 %v1684_v52, %v1028_v45  ;;  %v1686_v53 = vpop.f32.mrb[31].mxu0  ;;  %2625 = vmatprep.subr.bf16.mxu1 %v2897_v40 }
 0x25a   : > { %v1855_v1 = vadd.f32 %v2654_v51, %v3373_v25  ;;  %v2656_v7 = vadd.f32 %v1686_v53, %v1029_v50  ;;  %2143 = vmatprep.mubr.bf16.mxu1 %v1891_v55 }
 0x25b   : > { %v1857_v47 = vadd.f32 %v2655_v62, %v3366_v48  ;;  %2144 = vmatmul.mubr.bf16.gmra.mrb[56].mxu1 %v1890_v6  ;;  %v1878_v19 = vmax.f32 %v1854_v60, 0.0  ;;  %v2900_v48 = vld [vmem:[%s3475_s7 + $0xb8] sm:$0xff]  }
 0x25c   : > { %v1858_v4 = vadd.f32 %v2656_v7, %v3373_v25  ;;  %2626 = vmatpush3.bf16.msra.mxu1 %v2897_v40  ;;  %v1879_v54 = vmax.f32 %v1855_v1, 0.0 }
 0x25d   : > { %v1881_v61 = vmax.f32 %v1857_v47, 0.0  ;;  %2627 = vmatprep.subr.bf16.mxu1 %v2898_v3 }
 0x25e   : > { %v1882_v0 = vmax.f32 %v1858_v4, 0.0 }
 0x25f   : > { %v1893_v8 = vpack.c.bf16 %v1881_v61, %v1878_v19 }
 0x260   : > { %2628 = vmatpush3.bf16.msra.mxu1 %v2898_v3  ;;  %v1894_v12 = vpack.c.bf16 %v1882_v0, %v1879_v54 }
 0x261   : > { %2629 = vmatprep.subr.bf16.mxu1 %v2899_v10 }
 0x262   : > { %2151 = vmatprep.mubr.bf16.mxu1 %v1894_v12 }
 0x263   : > { %2152 = vmatmul.mubr.bf16.gmra.mrb[60].mxu1 %v1893_v8 }
 0x264   : > { %2630 = vmatpush3.bf16.msra.mxu1 %v2899_v10  ;;  %2633 = vmatprep.mubr.bf16.mxu1 %v3331_v31 }
 0x265   : > { %2631 = vmatprep.subr.bf16.mxu1 %v2900_v48 }
 0x268   : > { %2632 = vmatpush3.bf16.msra.mxu1 %v2900_v48 }
 0x26b   : > { %2634 = vmatmul.mubr.bf16.vlgmr.msra.gmra.mrb[64].mxu1 %v3341_v56 }
 0x26c   : > { %2637 = vmatprep.mubr.bf16.mxu1 %v3359_v17 }
 0x273   : > { %2638 = vmatmul.mubr.bf16.gmra.mrb[68].mxu1 %v3381_v9 }
 0x31e   : > { %v2581_v25 = vpop.f32.mrb[48].mxu1 }
 0x31f   : > { %v2582_v13 = vpop.f32.mrb[49].mxu1 }
 0x320   : > { %v2583_v57 = vadd.f32 %v2582_v13, %v2581_v25  ;;  %v2584_v14 = vpop.f32.mrb[50].mxu1 }
 0x321   : > { %v2585_v18 = vpop.f32.mrb[51].mxu1 }
 0x322   : > { %v2586_v15 = vadd.f32 %v2585_v18, %v2584_v14  ;;  %v2130_v27 = vadd.f32 %v2583_v57, %v2458_v28 }
 0x324   : > { %v2133_v39 = vadd.f32 %v2586_v15, %v2458_v28 }
 0x326   : > { %v2587_v16 = vpop.f32.mrb[52].mxu1 }
 0x327   : > { %v2588_v20 = vpop.f32.mrb[53].mxu1 }
 0x328   : > { %v2589_v63 = vadd.f32 %v2588_v20, %v2587_v16  ;;  %v2590_v21 = vpop.f32.mrb[54].mxu1 }
 0x329   : > { %v2591_v42 = vpop.f32.mrb[55].mxu1 }
 0x32a   : > { %v2592_v31 = vadd.f32 %v2591_v42, %v2590_v21  ;;  %v2138_v29 = vadd.f32 %v2589_v63, %v2458_v28 }
 0x32c   : > { %v2141_v11 = vadd.f32 %v2592_v31, %v2458_v28 }
 0x32e   : > { %v2593_v22 = vpop.f32.mrb[56].mxu1 }
 0x32f   : > { %v2594_v23 = vpop.f32.mrb[57].mxu1 }
 0x330   : > { %v2595_v56 = vadd.f32 %v2594_v23, %v2593_v22  ;;  %v2596_v2 = vpop.f32.mrb[58].mxu1 }
 0x331   : > { %v2597_v17 = vpop.f32.mrb[59].mxu1 }
 0x332   : > { %v2598_v32 = vadd.f32 %v2597_v17, %v2596_v2  ;;  %v2146_v44 = vadd.f32 %v2595_v56, %v2458_v28 }
 0x334   : > { %v2149_v51 = vadd.f32 %v2598_v32, %v2458_v28 }
 0x336   : > { %v2599_v9 = vpop.f32.mrb[60].mxu1 }
 0x337   : > { %v2600_v58 = vpop.f32.mrb[61].mxu1 }
 0x338   : > { %v2601_v24 = vadd.f32 %v2600_v58, %v2599_v9  ;;  %v2602_v5 = vpop.f32.mrb[62].mxu1 }
 0x339   : > { %v2603_v36 = vpop.f32.mrb[63].mxu1 }
 0x33a   : > { %v2604_v26 = vadd.f32 %v2603_v36, %v2602_v5  ;;  %v2154_v41 = vadd.f32 %v2601_v24, %v2458_v28 }
 0x33c   : > { %v2157_v49 = vadd.f32 %v2604_v26, %v2458_v28 }
 0x33e   : > { %v2635_v30 = vpop.f32.mrb[64].mxu1 }
 0x33f   : > { %v2203_v37 = vadd.f32 %v2635_v30, %v2138_v29  ;;  %v2194_v33 = vpop.f32.mrb[65].mxu1 }
 0x340   : > { %v2195_v38 = vadd.f32 %v2194_v33, %v2130_v27  ;;  %v2636_v34 = vpop.f32.mrb[66].mxu1 }
 0x341   : > { %2227 = vst [vmem:[%s3455_s12 + $0x10] sm:$0xff] %v2203_v37  ;;  %v2206_v59 = vadd.f32 %v2636_v34, %v2141_v11  ;;  %v2197_v40 = vpop.f32.mrb[67].mxu1 }
 0x342   : > { %2225 = vst [vmem:[%s3455_s12] sm:$0xff] %v2195_v38  ;;  %v2198_v35 = vadd.f32 %v2197_v40, %v2133_v39 }
 0x343   : > { %2228 = vst [vmem:[%s3455_s12 + $0x18] sm:$0xff] %v2206_v59 }
 0x344   : > { %2226 = vst [vmem:[%s3455_s12 + $0x8] sm:$0xff] %v2198_v35 }
 0x346   : > { %v2639_v43 = vpop.f32.mrb[68].mxu1 }
 0x347   : > { %v2219_v45 = vadd.f32 %v2639_v43, %v2154_v41  ;;  %v2210_v46 = vpop.f32.mrb[69].mxu1 }
 0x348   : > { %v2211_v6 = vadd.f32 %v2210_v46, %v2146_v44  ;;  %v2640_v50 = vpop.f32.mrb[70].mxu1 }
 0x349   : > { %2231 = vst [vmem:[%s3455_s12 + $0x30] sm:$0xff] %v2219_v45  ;;  %v2222_v52 = vadd.f32 %v2640_v50, %v2157_v49  ;;  %v2213_v55 = vpop.f32.mrb[71].mxu1 }
 0x34a   : > { %2229 = vst [vmem:[%s3455_s12 + $0x20] sm:$0xff] %v2211_v6  ;;  %v2214_v60 = vadd.f32 %v2213_v55, %v2149_v51 }
 0x34b   : > { %2232 = vst [vmem:[%s3455_s12 + $0x38] sm:$0xff] %v2222_v52 }
 0x34c   : > { %2230 = vst [vmem:[%s3455_s12 + $0x28] sm:$0xff] %v2214_v60 }
 0x34d PF: > { %s20_s30 = sadd.s32 1, %s2939_s30  }
 0x34e   : > { %p17_p3 = scmp.ge.s32.totalorder %s20_s30, 4  }
 0x350   :  { %19 = sbr.rel (!%p17_p3) target bundleno = 1 (0x1), region = 94 }
 0x357   :  { %2255 = vsyncpa [#allocation3], 1 }
 0x358   :  { %2257 = vsyncpa [#allocation3 + $0x1], 1 }

</bundles_post_ra>
